<compile_context>
chip_gen: v5e
topology: v5e:2x2
jax: 0.10.0
libtpu: 0.0.40
codegen_flags: <defaults>
</compile_context>

<pallas_src>
import math
from functools import partial

import jax
import jax.numpy as jnp
from jax.experimental import pallas as pl
from jax.experimental.pallas import tpu as pltpu


def _round_up(n, m):
    return -(-n // m) * m


def _pack_layout(num_nodes, num_rels):
    """Row/lane layout of the packed small-parameter slab."""
    E, R = num_nodes, num_rels
    erows = _round_up(E, 8)                                   # sublane-aligned blocks
    lane = _round_up(max(3 * E, E + R + 1, 128), 128)         # lane-dense width
    return dict(
        lane=lane,
        row_wqkv=0,                    # rows [0, E)        : wq*scale | wk | wv
        row_vecs=erows,                # rows [E, E+8)      : 8 bias/LN vectors
        row_wo=erows + 8,              # rows [E+8, 2E+8)   : attention out-proj
        row_whead=2 * erows + 8,       # rows [2E+8, 3E+8)  : we | wr | wp
        rows=3 * erows + 8,
    )


def _layernorm(x, w, b, eps=1e-5):
    mu = jnp.mean(x, axis=-1, keepdims=True)
    var = jnp.mean((x - mu) ** 2, axis=-1, keepdims=True)
    return (x - mu) * jax.lax.rsqrt(var + eps) * w + b


def _softmax_last(x):
    m = jnp.max(x, axis=-1, keepdims=True)
    e = jnp.exp(x - m)
    return e / jnp.sum(e, axis=-1, keepdims=True)


def _decoder_kernel(x_ref, pack_ref, w1_ref, b1_ref, w2_ref, out_ref, *, E, R, lay):
    x = x_ref[...]                                            # (B, E) f32

    # ---- unpack the fused small-parameter slab (one DMA for ~19 tensors) ----
    wqkv = pack_ref[lay["row_wqkv"]:lay["row_wqkv"] + E, :]   # (E, P)
    vecs = pack_ref[lay["row_vecs"]:lay["row_vecs"] + 8, :]   # (8, P)
    bqkv = vecs[0:1, :]
    bo = vecs[1:2, 0:E]
    ln1w = vecs[2:3, 0:E]
    ln1b = vecs[3:4, 0:E]
    ln2w = vecs[4:5, 0:E]
    ln2b = vecs[5:6, 0:E]
    b2 = vecs[6:7, 0:E]
    bhead = vecs[7:8, :]
    wo = pack_ref[lay["row_wo"]:lay["row_wo"] + E, 0:E]       # (E, E)
    whead = pack_ref[lay["row_whead"]:lay["row_whead"] + E, :]  # (E, P)

    # ---- fused single-head self-attention (1/sqrt(E) folded into wq/bq) ----
    qkv = jnp.dot(x, wqkv, preferred_element_type=jnp.float32) + bqkv   # (B, P)
    q = qkv[:, 0:E]
    k = qkv[:, E:2 * E]
    v = qkv[:, 2 * E:3 * E]
    scores = jax.lax.dot_general(q, k, (((1,), (1,)), ((), ())),
                                 preferred_element_type=jnp.float32)    # (B, B)
    attn = _softmax_last(scores)
    ctx = jnp.dot(attn, v, preferred_element_type=jnp.float32)
    attn_out = jnp.dot(ctx, wo, preferred_element_type=jnp.float32) + bo

    # ---- post-norm transformer encoder layer (dropout == identity / eval) ----
    h = _layernorm(x + attn_out, ln1w, ln1b)

    # Feed-forward: bf16 weights, f32 accumulation on the MXU.
    ff = jnp.dot(h.astype(jnp.bfloat16), w1_ref[...],
                 preferred_element_type=jnp.float32) + b1_ref[...]
    ff = jnp.maximum(ff, 0.0)
    ff = jnp.dot(ff.astype(jnp.bfloat16), w2_ref[...],
                 preferred_element_type=jnp.float32) + b2
    h = _layernorm(h + ff, ln2w, ln2b)

    # ---- fused, lane-dense output heads ----
    # lanes: [0,E) entity logits | [E,E+R) relation logits | E+R position | pad 0
    head = jnp.dot(h, whead, preferred_element_type=jnp.float32) + bhead
    head = jnp.maximum(head, 0.0)                             # ReLU (padding stays 0)

    lane = jax.lax.broadcasted_iota(jnp.int32, head.shape, 1)
    ent_mask = lane < E
    rel_mask = (lane >= E) & (lane < E + R)
    pos_mask = lane == (E + R)
    neg = jnp.float32(-1e30)

    ent_l = jnp.where(ent_mask, head, neg)
    ent_e = jnp.where(ent_mask,
                      jnp.exp(ent_l - jnp.max(ent_l, axis=-1, keepdims=True)), 0.0)
    ent = ent_e / jnp.sum(ent_e, axis=-1, keepdims=True)      # softmax over E lanes

    rel_l = jnp.where(rel_mask, head, neg)
    rel_e = jnp.where(rel_mask,
                      jnp.exp(rel_l - jnp.max(rel_l, axis=-1, keepdims=True)), 0.0)
    rel = rel_e / jnp.sum(rel_e, axis=-1, keepdims=True)      # softmax over R lanes

    pos = jnp.where(pos_mask, jax.nn.sigmoid(head), 0.0)      # sigmoid(relu(.))

    out_ref[...] = ent + rel + pos                            # one unmasked 128-lane store


def init_decoder_params(num_nodes, num_rels, dim_feedforward=2048, seed=0):
    """Deterministic synthetic parameter init (xavier-uniform style), f32."""
    key = jax.random.PRNGKey(seed)
    keys = iter(jax.random.split(key, 32))

    def xavier(k, fan_in, fan_out):
        bound = math.sqrt(6.0 / (fan_in + fan_out))
        return jax.random.uniform(k, (fan_in, fan_out), jnp.float32, -bound, bound)

    def bias(k, fan_in, fan_out):
        bound = 1.0 / math.sqrt(fan_in)
        return jax.random.uniform(k, (1, fan_out), jnp.float32, -bound, bound)

    E, R, F = num_nodes, num_rels, dim_feedforward
    return {
        "wq": xavier(next(keys), E, E), "bq": jnp.zeros((1, E), jnp.float32),
        "wk": xavier(next(keys), E, E), "bk": jnp.zeros((1, E), jnp.float32),
        "wv": xavier(next(keys), E, E), "bv": jnp.zeros((1, E), jnp.float32),
        "wo": xavier(next(keys), E, E), "bo": jnp.zeros((1, E), jnp.float32),
        "ln1w": jnp.ones((1, E), jnp.float32), "ln1b": jnp.zeros((1, E), jnp.float32),
        "ln2w": jnp.ones((1, E), jnp.float32), "ln2b": jnp.zeros((1, E), jnp.float32),
        "w1": xavier(next(keys), E, F), "b1": bias(next(keys), E, F),
        "w2": xavier(next(keys), F, E), "b2": bias(next(keys), F, E),
        "we": xavier(next(keys), E, E), "be": bias(next(keys), E, E),
        "wr": xavier(next(keys), E, R), "br": bias(next(keys), E, R),
        "wp": xavier(next(keys), E, 1), "bp": bias(next(keys), E, 1),
    }


def pack_decoder_params(p, num_nodes, num_rels):
    """One-time prep: fuse/pack small params, fold attention scale, bf16 FF weights."""
    E, R = num_nodes, num_rels
    lay = _pack_layout(E, R)
    P = lay["lane"]
    scale = 1.0 / math.sqrt(E)

    pack = jnp.zeros((lay["rows"], P), jnp.float32)

    wqkv = jnp.concatenate([p["wq"] * scale, p["wk"], p["wv"]], axis=1)   # (E, 3E)
    pack = pack.at[lay["row_wqkv"]:lay["row_wqkv"] + E, 0:3 * E].set(wqkv)

    v = lay["row_vecs"]
    bqkv = jnp.concatenate([p["bq"] * scale, p["bk"], p["bv"]], axis=1)[0]
    pack = pack.at[v + 0, 0:3 * E].set(bqkv)
    pack = pack.at[v + 1, 0:E].set(p["bo"][0])
    pack = pack.at[v + 2, 0:E].set(p["ln1w"][0])
    pack = pack.at[v + 3, 0:E].set(p["ln1b"][0])
    pack = pack.at[v + 4, 0:E].set(p["ln2w"][0])
    pack = pack.at[v + 5, 0:E].set(p["ln2b"][0])
    pack = pack.at[v + 6, 0:E].set(p["b2"][0])
    bhead = jnp.concatenate([p["be"], p["br"], p["bp"]], axis=1)[0]       # (E+R+1,)
    pack = pack.at[v + 7, 0:E + R + 1].set(bhead)

    pack = pack.at[lay["row_wo"]:lay["row_wo"] + E, 0:E].set(p["wo"])
    whead = jnp.concatenate([p["we"], p["wr"], p["wp"]], axis=1)          # (E, E+R+1)
    pack = pack.at[lay["row_whead"]:lay["row_whead"] + E, 0:E + R + 1].set(whead)

    return {
        "pack": pack,
        "w1": p["w1"].astype(jnp.bfloat16),
        "b1": p["b1"],
        "w2": p["w2"].astype(jnp.bfloat16),
    }


def decoder_forward(x, packed, num_nodes, num_rels):
    """x: (B, num_nodes) f32 -> (entity (B,E), position (B,1), relation (B,R))."""
    B = x.shape[0]
    E, R = num_nodes, num_rels
    lay = _pack_layout(E, R)
    P = lay["lane"]
    kernel = partial(_decoder_kernel, E=E, R=R, lay=lay)
    vmem = pl.BlockSpec(memory_space=pltpu.MemorySpace.VMEM)
    slab = pl.pallas_call(
        kernel,
        out_shape=jax.ShapeDtypeStruct((B, P), jnp.float32),
        in_specs=[vmem] * 5,
        out_specs=vmem,
    )(x, packed["pack"], packed["w1"], packed["b1"], packed["w2"])
    entity = slab[:, :E]
    relation = slab[:, E:E + R]
    position = slab[:, E + R:E + R + 1]
    return entity, position, relation


def decoder_reference(x, p):
    """Pure-JAX f32 reference (same math as the PyTorch module, eval mode)."""
    E = x.shape[-1]
    scale = 1.0 / math.sqrt(E)
    q = x @ p["wq"] + p["bq"]
    k = x @ p["wk"] + p["bk"]
    v = x @ p["wv"] + p["bv"]
    attn = jax.nn.softmax((q @ k.T) * scale, axis=-1)
    a = (attn @ v) @ p["wo"] + p["bo"]
    h = _layernorm(x + a, p["ln1w"], p["ln1b"])
    ff = jnp.maximum(h @ p["w1"] + p["b1"], 0.0) @ p["w2"] + p["b2"]
    h = _layernorm(h + ff, p["ln2w"], p["ln2b"])
    ent = jax.nn.softmax(jnp.maximum(h @ p["we"] + p["be"], 0.0), axis=-1)
    rel = jax.nn.softmax(jnp.maximum(h @ p["wr"] + p["br"], 0.0), axis=-1)
    pos = jax.nn.sigmoid(jnp.maximum(h @ p["wp"] + p["bp"], 0.0))
    return ent, pos, rel


if __name__ == "__main__":
    num_nodes = 32   # d_model of the attention / entity vocab size
    num_rels = 4
    batch = 8        # x.view(-1, 1, num_nodes) -> sequence length 8

    raw = init_decoder_params(num_nodes, num_rels, dim_feedforward=2048, seed=0)
    packed = pack_decoder_params(raw, num_nodes, num_rels)
    x = jax.random.normal(jax.random.PRNGKey(0), (batch, num_nodes), jnp.float32)

    entity, position, relation = decoder_forward(x, packed, num_nodes, num_rels)
    jax.block_until_ready((entity, position, relation))

    assert entity.shape == (batch, num_nodes)
    assert position.shape == (batch, 1)
    assert relation.shape == (batch, num_rels)
    # softmax rows sum to 1, sigmoid(relu(x)) in (0, 1)
    assert bool(jnp.allclose(jnp.sum(entity, axis=1), 1.0, atol=1e-4))
    assert bool(jnp.allclose(jnp.sum(relation, axis=1), 1.0, atol=1e-4))
    assert bool(jnp.all((position > 0.0) & (position < 1.0)))

    # numerical check vs. pure-f32 reference (bf16 FF weights -> loose tol)
    ent_ref, pos_ref, rel_ref = decoder_reference(x, raw)
    assert bool(jnp.allclose(entity, ent_ref, atol=2e-2))
    assert bool(jnp.allclose(relation, rel_ref, atol=2e-2))
    assert bool(jnp.allclose(position, pos_ref, atol=2e-2))

    print("KERNEL_OK")
</pallas_src>

<mosaic_0001>
module attributes {stable_mosaic.version = 11 : i64} {
  func.func @_decoder_kernel(%arg0: memref<8x32xf32, #tpu.memory_space<vmem>>, %arg1: memref<104x128xf32, #tpu.memory_space<vmem>>, %arg2: memref<32x2048xbf16, #tpu.memory_space<vmem>>, %arg3: memref<1x2048xf32, #tpu.memory_space<vmem>>, %arg4: memref<2048x32xbf16, #tpu.memory_space<vmem>>, %arg5: memref<8x128xf32, #tpu.memory_space<vmem>>) attributes {dimension_semantics = [], scalar_prefetch = 0 : i64, scratch_operands = 0 : i64, tpu.core_type = #tpu.core_type<tc>} {
    %c0 = arith.constant 0 : index
    %c0_0 = arith.constant 0 : index
    %0 = vector.load %arg0[%c0, %c0_0] : memref<8x32xf32, #tpu.memory_space<vmem>>, vector<8x32xf32>
    %c0_1 = arith.constant 0 : index
    %c0_2 = arith.constant 0 : index
    %1 = vector.load %arg1[%c0_1, %c0_2] : memref<104x128xf32, #tpu.memory_space<vmem>>, vector<32x128xf32>
    %c32 = arith.constant 32 : index
    %c0_3 = arith.constant 0 : index
    %2 = vector.load %arg1[%c32, %c0_3] : memref<104x128xf32, #tpu.memory_space<vmem>>, vector<8x128xf32>
    %3 = vector.extract_strided_slice %2 {offsets = [0, 0], sizes = [1, 128], strides = [1, 1]} : vector<8x128xf32> to vector<1x128xf32>
    %4 = vector.extract_strided_slice %2 {offsets = [1, 0], sizes = [1, 32], strides = [1, 1]} : vector<8x128xf32> to vector<1x32xf32>
    %5 = vector.extract_strided_slice %2 {offsets = [2, 0], sizes = [1, 32], strides = [1, 1]} : vector<8x128xf32> to vector<1x32xf32>
    %6 = vector.extract_strided_slice %2 {offsets = [3, 0], sizes = [1, 32], strides = [1, 1]} : vector<8x128xf32> to vector<1x32xf32>
    %7 = vector.extract_strided_slice %2 {offsets = [4, 0], sizes = [1, 32], strides = [1, 1]} : vector<8x128xf32> to vector<1x32xf32>
    %8 = vector.extract_strided_slice %2 {offsets = [5, 0], sizes = [1, 32], strides = [1, 1]} : vector<8x128xf32> to vector<1x32xf32>
    %9 = vector.extract_strided_slice %2 {offsets = [6, 0], sizes = [1, 32], strides = [1, 1]} : vector<8x128xf32> to vector<1x32xf32>
    %10 = vector.extract_strided_slice %2 {offsets = [7, 0], sizes = [1, 128], strides = [1, 1]} : vector<8x128xf32> to vector<1x128xf32>
    %c40 = arith.constant 40 : index
    %c0_4 = arith.constant 0 : index
    %11 = vector.load %arg1[%c40, %c0_4] : memref<104x128xf32, #tpu.memory_space<vmem>>, vector<32x32xf32>
    %c72 = arith.constant 72 : index
    %c0_5 = arith.constant 0 : index
    %12 = vector.load %arg1[%c72, %c0_5] : memref<104x128xf32, #tpu.memory_space<vmem>>, vector<32x128xf32>
    %cst = arith.constant dense<0.000000e+00> : vector<8x128xf32>
    %13 = tpu.matmul %0, %1, %cst {dimension_numbers = #tpu.dot_dimension_numbers<[1], [0], [0], [1], [0, 0, 1, 1], [], []>} : vector<8x32xf32>, vector<32x128xf32>, vector<8x128xf32> -> vector<8x128xf32>
    %14 = vector.broadcast %3 : vector<1x128xf32> to vector<8x128xf32>
    %15 = arith.addf %13, %14 : vector<8x128xf32>
    %16 = vector.extract_strided_slice %15 {offsets = [0, 0], sizes = [8, 32], strides = [1, 1]} : vector<8x128xf32> to vector<8x32xf32>
    %17 = vector.extract_strided_slice %15 {offsets = [0, 32], sizes = [8, 32], strides = [1, 1]} : vector<8x128xf32> to vector<8x32xf32>
    %18 = vector.extract_strided_slice %15 {offsets = [0, 64], sizes = [8, 32], strides = [1, 1]} : vector<8x128xf32> to vector<8x32xf32>
    %cst_6 = arith.constant dense<0.000000e+00> : vector<8x8xf32>
    %19 = tpu.matmul %16, %17, %cst_6 {dimension_numbers = #tpu.dot_dimension_numbers<[1], [1], [0], [0], [0, 0, 1, 0], [], []>} : vector<8x32xf32>, vector<8x32xf32>, vector<8x8xf32> -> vector<8x8xf32>
    %cst_7 = arith.constant dense<0xFF800000> : vector<8xf32>
    %20 = vector.multi_reduction <maximumf>, %19, %cst_7 [1] : vector<8x8xf32> to vector<8xf32>
    %21 = vector.shape_cast %20 : vector<8xf32> to vector<8x1xf32>
    %22 = vector.broadcast %21 : vector<8x1xf32> to vector<8x8xf32>
    %23 = arith.subf %19, %22 : vector<8x8xf32>
    %24 = math.exp %23 : vector<8x8xf32>
    %cst_8 = arith.constant dense<0.000000e+00> : vector<8xf32>
    %25 = vector.multi_reduction <add>, %24, %cst_8 [1] : vector<8x8xf32> to vector<8xf32>
    %26 = vector.shape_cast %25 : vector<8xf32> to vector<8x1xf32>
    %27 = vector.broadcast %26 : vector<8x1xf32> to vector<8x8xf32>
    %28 = arith.divf %24, %27 : vector<8x8xf32>
    %cst_9 = arith.constant dense<0.000000e+00> : vector<8x32xf32>
    %29 = tpu.matmul %28, %18, %cst_9 {dimension_numbers = #tpu.dot_dimension_numbers<[1], [0], [0], [1], [0, 0, 1, 1], [], []>} : vector<8x8xf32>, vector<8x32xf32>, vector<8x32xf32> -> vector<8x32xf32>
    %cst_10 = arith.constant dense<0.000000e+00> : vector<8x32xf32>
    %30 = tpu.matmul %29, %11, %cst_10 {dimension_numbers = #tpu.dot_dimension_numbers<[1], [0], [0], [1], [0, 0, 1, 1], [], []>} : vector<8x32xf32>, vector<32x32xf32>, vector<8x32xf32> -> vector<8x32xf32>
    %31 = vector.broadcast %4 : vector<1x32xf32> to vector<8x32xf32>
    %32 = arith.addf %30, %31 : vector<8x32xf32>
    %33 = arith.addf %0, %32 : vector<8x32xf32>
    %cst_11 = arith.constant dense<0.000000e+00> : vector<8xf32>
    %34 = vector.multi_reduction <add>, %33, %cst_11 [1] : vector<8x32xf32> to vector<8xf32>
    %35 = vector.shape_cast %34 : vector<8xf32> to vector<8x1xf32>
    %cst_12 = arith.constant 3.200000e+01 : f32
    %36 = vector.broadcast %cst_12 : f32 to vector<8x1xf32>
    %37 = arith.divf %35, %36 : vector<8x1xf32>
    %38 = vector.broadcast %37 : vector<8x1xf32> to vector<8x32xf32>
    %39 = arith.subf %33, %38 : vector<8x32xf32>
    %40 = arith.mulf %39, %39 : vector<8x32xf32>
    %cst_13 = arith.constant dense<0.000000e+00> : vector<8xf32>
    %41 = vector.multi_reduction <add>, %40, %cst_13 [1] : vector<8x32xf32> to vector<8xf32>
    %42 = vector.shape_cast %41 : vector<8xf32> to vector<8x1xf32>
    %cst_14 = arith.constant 3.200000e+01 : f32
    %43 = vector.broadcast %cst_14 : f32 to vector<8x1xf32>
    %44 = arith.divf %42, %43 : vector<8x1xf32>
    %45 = vector.broadcast %37 : vector<8x1xf32> to vector<8x32xf32>
    %46 = arith.subf %33, %45 : vector<8x32xf32>
    %cst_15 = arith.constant 9.99999974E-6 : f32
    %47 = vector.broadcast %cst_15 : f32 to vector<8x1xf32>
    %48 = arith.addf %44, %47 : vector<8x1xf32>
    %49 = math.rsqrt %48 : vector<8x1xf32>
    %50 = vector.broadcast %49 : vector<8x1xf32> to vector<8x32xf32>
    %51 = arith.mulf %46, %50 : vector<8x32xf32>
    %52 = vector.broadcast %5 : vector<1x32xf32> to vector<8x32xf32>
    %53 = arith.mulf %51, %52 : vector<8x32xf32>
    %54 = vector.broadcast %6 : vector<1x32xf32> to vector<8x32xf32>
    %55 = arith.addf %53, %54 : vector<8x32xf32>
    %56 = arith.truncf %55 : vector<8x32xf32> to vector<8x32xbf16>
    %c0_16 = arith.constant 0 : index
    %c0_17 = arith.constant 0 : index
    %57 = vector.load %arg2[%c0_16, %c0_17] : memref<32x2048xbf16, #tpu.memory_space<vmem>>, vector<32x2048xbf16>
    %cst_18 = arith.constant dense<0.000000e+00> : vector<8x2048xf32>
    %58 = tpu.matmul %56, %57, %cst_18 {dimension_numbers = #tpu.dot_dimension_numbers<[1], [0], [0], [1], [0, 0, 1, 1], [], []>} : vector<8x32xbf16>, vector<32x2048xbf16>, vector<8x2048xf32> -> vector<8x2048xf32>
    %c0_19 = arith.constant 0 : index
    %c0_20 = arith.constant 0 : index
    %59 = vector.load %arg3[%c0_19, %c0_20] : memref<1x2048xf32, #tpu.memory_space<vmem>>, vector<1x2048xf32>
    %60 = vector.broadcast %59 : vector<1x2048xf32> to vector<8x2048xf32>
    %61 = arith.addf %58, %60 : vector<8x2048xf32>
    %cst_21 = arith.constant 0.000000e+00 : f32
    %62 = vector.broadcast %cst_21 : f32 to vector<8x2048xf32>
    %63 = arith.maximumf %61, %62 : vector<8x2048xf32>
    %64 = arith.truncf %63 : vector<8x2048xf32> to vector<8x2048xbf16>
    %c0_22 = arith.constant 0 : index
    %c0_23 = arith.constant 0 : index
    %65 = vector.load %arg4[%c0_22, %c0_23] : memref<2048x32xbf16, #tpu.memory_space<vmem>>, vector<2048x32xbf16>
    %cst_24 = arith.constant dense<0.000000e+00> : vector<8x32xf32>
    %66 = tpu.matmul %64, %65, %cst_24 {dimension_numbers = #tpu.dot_dimension_numbers<[1], [0], [0], [1], [0, 0, 1, 1], [], []>} : vector<8x2048xbf16>, vector<2048x32xbf16>, vector<8x32xf32> -> vector<8x32xf32>
    %67 = vector.broadcast %9 : vector<1x32xf32> to vector<8x32xf32>
    %68 = arith.addf %66, %67 : vector<8x32xf32>
    %69 = arith.addf %55, %68 : vector<8x32xf32>
    %cst_25 = arith.constant dense<0.000000e+00> : vector<8xf32>
    %70 = vector.multi_reduction <add>, %69, %cst_25 [1] : vector<8x32xf32> to vector<8xf32>
    %71 = vector.shape_cast %70 : vector<8xf32> to vector<8x1xf32>
    %cst_26 = arith.constant 3.200000e+01 : f32
    %72 = vector.broadcast %cst_26 : f32 to vector<8x1xf32>
    %73 = arith.divf %71, %72 : vector<8x1xf32>
    %74 = vector.broadcast %73 : vector<8x1xf32> to vector<8x32xf32>
    %75 = arith.subf %69, %74 : vector<8x32xf32>
    %76 = arith.mulf %75, %75 : vector<8x32xf32>
    %cst_27 = arith.constant dense<0.000000e+00> : vector<8xf32>
    %77 = vector.multi_reduction <add>, %76, %cst_27 [1] : vector<8x32xf32> to vector<8xf32>
    %78 = vector.shape_cast %77 : vector<8xf32> to vector<8x1xf32>
    %cst_28 = arith.constant 3.200000e+01 : f32
    %79 = vector.broadcast %cst_28 : f32 to vector<8x1xf32>
    %80 = arith.divf %78, %79 : vector<8x1xf32>
    %81 = vector.broadcast %73 : vector<8x1xf32> to vector<8x32xf32>
    %82 = arith.subf %69, %81 : vector<8x32xf32>
    %cst_29 = arith.constant 9.99999974E-6 : f32
    %83 = vector.broadcast %cst_29 : f32 to vector<8x1xf32>
    %84 = arith.addf %80, %83 : vector<8x1xf32>
    %85 = math.rsqrt %84 : vector<8x1xf32>
    %86 = vector.broadcast %85 : vector<8x1xf32> to vector<8x32xf32>
    %87 = arith.mulf %82, %86 : vector<8x32xf32>
    %88 = vector.broadcast %7 : vector<1x32xf32> to vector<8x32xf32>
    %89 = arith.mulf %87, %88 : vector<8x32xf32>
    %90 = vector.broadcast %8 : vector<1x32xf32> to vector<8x32xf32>
    %91 = arith.addf %89, %90 : vector<8x32xf32>
    %cst_30 = arith.constant dense<0.000000e+00> : vector<8x128xf32>
    %92 = tpu.matmul %91, %12, %cst_30 {dimension_numbers = #tpu.dot_dimension_numbers<[1], [0], [0], [1], [0, 0, 1, 1], [], []>} : vector<8x32xf32>, vector<32x128xf32>, vector<8x128xf32> -> vector<8x128xf32>
    %93 = vector.broadcast %10 : vector<1x128xf32> to vector<8x128xf32>
    %94 = arith.addf %92, %93 : vector<8x128xf32>
    %cst_31 = arith.constant 0.000000e+00 : f32
    %95 = vector.broadcast %cst_31 : f32 to vector<8x128xf32>
    %96 = arith.maximumf %94, %95 : vector<8x128xf32>
    %97 = tpu.iota {dimensions = array<i32: 1>} : vector<8x128xi32>
    %c32_i32 = arith.constant 32 : i32
    %98 = vector.broadcast %c32_i32 : i32 to vector<8x128xi32>
    %99 = arith.cmpi slt, %97, %98 : vector<8x128xi32>
    %c32_i32_32 = arith.constant 32 : i32
    %100 = vector.broadcast %c32_i32_32 : i32 to vector<8x128xi32>
    %101 = arith.cmpi sge, %97, %100 : vector<8x128xi32>
    %c36_i32 = arith.constant 36 : i32
    %102 = vector.broadcast %c36_i32 : i32 to vector<8x128xi32>
    %103 = arith.cmpi slt, %97, %102 : vector<8x128xi32>
    %104 = arith.andi %101, %103 : vector<8x128xi1>
    %c36_i32_33 = arith.constant 36 : i32
    %105 = vector.broadcast %c36_i32_33 : i32 to vector<8x128xi32>
    %106 = arith.cmpi eq, %97, %105 : vector<8x128xi32>
    %cst_34 = arith.constant -1.000000e+30 : f32
    %107 = vector.broadcast %cst_34 : f32 to vector<8x128xf32>
    %108 = arith.select %99, %96, %107 : vector<8x128xi1>, vector<8x128xf32>
    %cst_35 = arith.constant dense<0xFF800000> : vector<8xf32>
    %109 = vector.multi_reduction <maximumf>, %108, %cst_35 [1] : vector<8x128xf32> to vector<8xf32>
    %110 = vector.shape_cast %109 : vector<8xf32> to vector<8x1xf32>
    %111 = vector.broadcast %110 : vector<8x1xf32> to vector<8x128xf32>
    %112 = arith.subf %108, %111 : vector<8x128xf32>
    %113 = math.exp %112 : vector<8x128xf32>
    %cst_36 = arith.constant 0.000000e+00 : f32
    %114 = vector.broadcast %cst_36 : f32 to vector<8x128xf32>
    %115 = arith.select %99, %113, %114 : vector<8x128xi1>, vector<8x128xf32>
    %cst_37 = arith.constant dense<0.000000e+00> : vector<8xf32>
    %116 = vector.multi_reduction <add>, %115, %cst_37 [1] : vector<8x128xf32> to vector<8xf32>
    %117 = vector.shape_cast %116 : vector<8xf32> to vector<8x1xf32>
    %118 = vector.broadcast %117 : vector<8x1xf32> to vector<8x128xf32>
    %119 = arith.divf %115, %118 : vector<8x128xf32>
    %cst_38 = arith.constant -1.000000e+30 : f32
    %120 = vector.broadcast %cst_38 : f32 to vector<8x128xf32>
    %121 = arith.select %104, %96, %120 : vector<8x128xi1>, vector<8x128xf32>
    %cst_39 = arith.constant dense<0xFF800000> : vector<8xf32>
    %122 = vector.multi_reduction <maximumf>, %121, %cst_39 [1] : vector<8x128xf32> to vector<8xf32>
    %123 = vector.shape_cast %122 : vector<8xf32> to vector<8x1xf32>
    %124 = vector.broadcast %123 : vector<8x1xf32> to vector<8x128xf32>
    %125 = arith.subf %121, %124 : vector<8x128xf32>
    %126 = math.exp %125 : vector<8x128xf32>
    %cst_40 = arith.constant 0.000000e+00 : f32
    %127 = vector.broadcast %cst_40 : f32 to vector<8x128xf32>
    %128 = arith.select %104, %126, %127 : vector<8x128xi1>, vector<8x128xf32>
    %cst_41 = arith.constant dense<0.000000e+00> : vector<8xf32>
    %129 = vector.multi_reduction <add>, %128, %cst_41 [1] : vector<8x128xf32> to vector<8xf32>
    %130 = vector.shape_cast %129 : vector<8xf32> to vector<8x1xf32>
    %131 = vector.broadcast %130 : vector<8x1xf32> to vector<8x128xf32>
    %132 = arith.divf %128, %131 : vector<8x128xf32>
    %133 = arith.negf %96 : vector<8x128xf32>
    %134 = math.exp %133 : vector<8x128xf32>
    %cst_42 = arith.constant 1.000000e+00 : f32
    %135 = vector.broadcast %cst_42 : f32 to vector<8x128xf32>
    %136 = arith.addf %135, %134 : vector<8x128xf32>
    %137 = arith.divf %135, %136 : vector<8x128xf32>
    %cst_43 = arith.constant 0.000000e+00 : f32
    %138 = vector.broadcast %cst_43 : f32 to vector<8x128xf32>
    %139 = arith.select %106, %137, %138 : vector<8x128xi1>, vector<8x128xf32>
    %140 = arith.addf %119, %132 : vector<8x128xf32>
    %141 = arith.addf %140, %139 : vector<8x128xf32>
    %c0_44 = arith.constant 0 : index
    %c0_45 = arith.constant 0 : index
    %142 = vector.load %arg5[%c0_44, %c0_45] : memref<8x128xf32, #tpu.memory_space<vmem>>, vector<8x128xf32>
    tpu.vector_store %arg5[%c0_44, %c0_45], %141 {strides = array<i32>} : memref<8x128xf32, #tpu.memory_space<vmem>>, vector<8x128xf32>,
    return
  }
}

</mosaic_0001>

<bundles_post_ra>
// kernel: tpu_custom_call.1
= control target key start
LH: loop header
LB: loop body
LE: loop exit
PB: predicated region body
PF: predicated region fallthrough
CT: control target
= control target key end

     0   :  { %s3692_s0 = inlined_call_operand.vmem [shape: f32[8,32], index: 0, kind: input, shape index: {}]   ;;  %s3693_s1 = inlined_call_operand.vmem [shape: f32[104,128], index: 1, kind: input, shape index: {}]   ;;  %s3694_s2 = inlined_call_operand.vmem [shape: bf16[32,2048], index: 2, kind: input, shape index: {}]   ;;  %s3695_s3 = inlined_call_operand.vmem [shape: f32[1,2048], index: 3, kind: input, shape index: {}]   ;;  %s3696_s4 = inlined_call_operand.vmem [shape: bf16[2048,32], index: 4, kind: input, shape index: {}]   ;;  %s3697_s5 = inlined_call_operand.hbm [shape: f32[8,128], index: 5, kind: output, shape index: {}]  }
   0x1   :  { %v26_v0 = vld [vmem:[%s3693_s1 + $0x18] sm:$0xff]  ;;  %v25_v1 = vld [vmem:[%s3693_s1 + $0x10] sm:$0xff]  ;;  %v24_v2 = vld [vmem:[%s3693_s1 + $0x8] sm:$0xff] }
   0x2   :  { %53 = vmatpush.msra.mxu0 %v26_v0 }
   0x3   :  { %10 = vsyncpa [#allocation3], 0  ;;  %v23_v3 = vld [vmem:[%s3693_s1] sm:$0xff]  ;;  %vm37_vm0 = vcmask 261120   ;;  %s2924_s30 = smov 96   ;;  %vm88_vm1 = vcmask 64512  }
   0x4   :  { %54 = vmatpush.msra.mxu0 %v25_v1  ;;  %v22_v4 = vld [vmem:[%s3692_s0] sm:$0xff]  ;;  %s2925_s0 = smov 64   ;;  %v30_v18 = vld [vmem:[%s3693_s1 + $0x38] sm:$0xff]  ;;  %v29_v19 = vld [vmem:[%s3693_s1 + $0x30] sm:$0xff]  ;;  %v2926_v40 = vmov 32.0   ;;  %s2039_s10 = sshll.u32 %s3697_s5, 4  ;;  %s2040_s10 = int_to_ptr.hbm [resolvable:$true] %s2039_s10 }
   0x5   :  { %v2977_v5 = vld [vmem:[%s3693_s1 + $0x20] sm:$0xff]  ;;  %v28_v33 = vld [vmem:[%s3693_s1 + $0x28] sm:$0xff] }
   0x6   :  { %55 = vmatpush.msra.mxu0 %v24_v2  ;;  %v36_v6 = vperm.slane %v2977_v5, 0  ;;  %v31_v17 = vld [vmem:[%s3693_s1 + $0x40] sm:$0xff]  ;;  %v139_v35 = vperm.slane %v2977_v5, 1  ;;  %v2127_v57 = vld [vmem:[%s3694_s2 + $0x88] sm:$0xf] }
   0x7   :  { %155 = vmatpush.msra.mxu3 %v31_v17  ;;  %v2119_v52 = vld [vmem:[%s3694_s2 + $0x80] sm:$0xf]  ;;  %v2727_v54 = vld [vmem:[%s3694_s2 + $0x84] sm:$0xf]  ;;  %v2736_v58 = vld [vmem:[%s3694_s2 + $0xc4] sm:$0xf0] }
   0x8   :  { %56 = vmatpush.msra.mxu0 %v23_v3  ;;  %v2735_v53 = vld [vmem:[%s3694_s2 + $0xbc] sm:$0xf0]  ;;  %v2121_v56 = vld [vmem:[%s3694_s2 + $0xc0] sm:$0xf0]  ;;  %v2128_v60 = vor.u32 %v2736_v58, %v2127_v57  ;;  %v2728_v61 = vld [vmem:[%s3694_s2 + $0x8c] sm:$0xf] }
   0x9   :  { %2048 = vmatmul.msk.f32.vlgmr.msra.gmra.mxu0 %vm37_vm0, %v22_v4  ;;  %156 = vmatpush.msra.mxu3 %v30_v18  ;;  %v2120_v55 = vor.u32 %v2735_v53, %v2119_v52  ;;  %v2124_v59 = vor.u32 %v2727_v54, %v2121_v56  ;;  %v2129_v62 = vld [vmem:[%s3694_s2 + $0xc8] sm:$0xf0]  ;;  %v2055_v0 = vld [vmem:[%s3694_s2] sm:$0xf]  ;;  %v2711_v2 = vld [vmem:[%s3694_s2 + $0x4] sm:$0xf] }
   0xa   :  { %v2132_v63 = vor.u32 %v2728_v61, %v2129_v62  ;;  %461 = vmatpush.bf16.msrb.mxu0 %v2128_v60  ;;  %v2719_v1 = vld [vmem:[%s3694_s2 + $0x3c] sm:$0xf0]  ;;  %v2153_v56 = vld [vmem:[%s3694_s2 + $0xe0] sm:$0xf0]  ;;  %v2740_v57 = vld [vmem:[%s3694_s2 + $0xe4] sm:$0xf0] }
   0xb   :  { %157 = vmatpush.msra.mxu3 %v29_v19  ;;  %v2056_v3 = vor.u32 %v2719_v1, %v2055_v0  ;;  %v2137_v19 = vld [vmem:[%s3694_s2 + $0xd0] sm:$0xf0]  ;;  %v2151_v53 = vld [vmem:[%s3694_s2 + $0xa0] sm:$0xf]  ;;  %v2732_v58 = vld [vmem:[%s3694_s2 + $0xac] sm:$0xf] }
   0xc   :  { %v2739_v54 = vld [vmem:[%s3694_s2 + $0xdc] sm:$0xf0] }
   0xd   :  { %158 = vmatpush.msra.mxu3 %v28_v33  ;;  %v2079_v33 = vld [vmem:[%s3694_s2 + $0x18] sm:$0xf]  ;;  %v2152_v61 = vor.u32 %v2739_v54, %v2151_v53  ;;  %v2723_v0 = vld [vmem:[%s3694_s2 + $0x5c] sm:$0xf0] }
   0xe   :  { %v2763_v53 = vld [vmem:[%s3696_s4 + $0xa0] sm:$0xff] }
   0xf   :  { %474 = vmatpush.bf16.msrb.mxu3 %v2132_v63  ;;  %v2087_v63 = vld [vmem:[%s3694_s2 + $0x20] sm:$0xf] }
  0x10   :  { %v2747_v54 = vld [vmem:[%s3696_s4 + $0x20] sm:$0xff] }
  0x86   :  { %v58_v7 = vpop.f32.mrf.mxu0 }
  0x87   :  { %v59_v8 = vadd.f32 %v58_v7, %v36_v6  ;;  %v2063_v6 = vld [vmem:[%s3694_s2 + $0x8] sm:$0xf] }
  0x88   :  { %v2720_v7 = vld [vmem:[%s3694_s2 + $0x44] sm:$0xf0] }
  0x89   :  { %62 = vrot.lane.b32.xlu0 %v59_v8, %s2924_s30 }
  0xfb   :  { %v63_v9 = vpop.permute.xlu0 %62 }
  0xfc   :  { %2049 = vmatpush.xpose.msk.msra.mxu1 %vm37_vm0, %v63_v9  ;;  %v2064_v9 = vor.u32 %v2720_v7, %v2063_v6  ;;  %v2095_v6 = vld [vmem:[%s3694_s2 + $0x28] sm:$0xf] }
  0xfd   :  { %v2724_v7 = vld [vmem:[%s3694_s2 + $0x64] sm:$0xf0] }
  0xfe   :  { %462 = vmatpush.bf16.msrb.mxu0 %v2064_v9  ;;  %v2097_v9 = vld [vmem:[%s3694_s2 + $0x68] sm:$0xf0] }
  0xff   :  { %2050 = vmatmul.msk.f32.vlgmr.msra.gmra.mxu1 %vm37_vm0, %v59_v8 }
 0x100   :  { %448 = vmatpush.bf16.msrb.mxu1 %v2124_v59  ;;  %v2161_v59 = vld [vmem:[%s3694_s2 + $0xe8] sm:$0xf0] }
 0x17c   :  { %v85_v10 = vpop.f32.mrf.mxu1 }
 0x17d   :  { %v89_v11 = vsel %vm88_vm1, %v85_v10, -inf }
 0x17e   :  { %90 = vmax.xlane.f32.xlu0 %v89_v11  ;;  %v2065_v11 = vld [vmem:[%s3694_s2 + $0x48] sm:$0xf0] }
 0x1f1   :  { %v91_v12 = vpop.xlane.xlu0 %90 }
 0x1f2   :  { %v92_v13 = vsub.f32 %v85_v10, %v91_v12  ;;  %v2712_v10 = vld [vmem:[%s3694_s2 + $0xc] sm:$0xf] }
 0x1f3   :  { %v2068_v12 = vor.u32 %v2712_v10, %v2065_v11  ;;  %v2088_v10 = vor.u32 %v2723_v0, %v2087_v63  ;;  %v2752_v63 = vld [vmem:[%s3696_s4 + $0x48] sm:$0xff] }
 0x1f4   :  { %v93_v14 = vmul.f32 1.442695, %v92_v13  ;;  %v2760_v0 = vld [vmem:[%s3696_s4 + $0x88] sm:$0xff] }
 0x1f5   :  { %475 = vmatpush.bf16.msrb.mxu3 %v2068_v12  ;;  %v2096_v12 = vor.u32 %v2724_v7, %v2095_v6  ;;  %v2790_v6 = vld [vmem:[%s3696_s4 + $0x178] sm:$0xff] }
 0x1f6   :  { %2875 = vpow2.f32 %v93_v14  ;;  %v2135_v14 = vld [vmem:[%s3694_s2 + $0x90] sm:$0xf]  ;;  %v2798_v7 = vld [vmem:[%s3696_s4 + $0x1b8] sm:$0xff] }
 0x1fc   :  { %v2876_v15 = vpop.eup %2875 }
 0x1fd   :  { %v95_v16 = vsel %vm88_vm1, %v2876_v15, 0.0 }
 0x1fe   :  { %96 = vadd.xlane.f32.xlu1 %v95_v16  ;;  %v2729_v16 = vld [vmem:[%s3694_s2 + $0x94] sm:$0xf] }
 0x217   :  { %113 = vrot.lane.b32.xlu1 %v59_v8, %s2925_s0 }
 0x271   :  { %v97_v20 = vpop.xlane.xlu1 %96 }
 0x272   :  { %2877 = vrcp.f32 %v97_v20  ;;  %v109_v26 = vand.u32 2147483648, %v97_v20  ;;  %vm103_vm3 = vweird.f32 %v97_v20  ;;  %v107_v27 = vand.u32 2147483647, %v97_v20 }
 0x273   :  { %2879 = vrcp.f32 %v2926_v40 }
 0x274   :  { %v110_v29 = vor.u32 1.1754944e-38, %v109_v26  ;;  %vm108_vm5 = vcmp.eq.f32.partialorder %v107_v27, 8.507059e+37  ;;  %v2071_v26 = vld [vmem:[%s3694_s2 + $0x10] sm:$0xf] }
 0x278   :  { %v2878_v21 = vpop.eup %2877 }
 0x279   :  { %v99_v22 = vmul.f32 %v2878_v21, %v97_v20  ;;  %vm104_vm2 = vweird.f32 %v2878_v21  ;;  %v2880_v41 = vpop.eup %2879  ;;  %v2143_v20 = vld [vmem:[%s3694_s2 + $0x98] sm:$0xf] }
 0x27a   :  { %vm105_vm4 = vmor %vm103_vm3, %vm104_vm2  ;;  %v168_v42 = vmul.f32 32.0, %v2880_v41  ;;  %vm172_vm6 = vweird.f32 %v2880_v41 }
 0x27b   :  { %v100_v23 = vsub.f32 1.0, %v99_v22  ;;  %v2140_v22 = vor.u32 %v2729_v16, %v2137_v19  ;;  %v2733_v16 = vld [vmem:[%s3694_s2 + $0xb4] sm:$0xf]  ;;  %v2742_v19 = vld [vmem:[%s3694_s2 + $0xf4] sm:$0xf0] }
 0x27c   :  { %v169_v43 = vsub.f32 1.0, %v168_v42 }
 0x27d   :  { %v101_v24 = vmul.f32 %v2878_v21, %v100_v23 }
 0x27e   :  { %v170_v44 = vmul.f32 %v2880_v41, %v169_v43 }
 0x27f   :  { %v102_v25 = vadd.f32 %v2878_v21, %v101_v24  ;;  %v2730_v24 = vld [vmem:[%s3694_s2 + $0x9c] sm:$0xf] }
 0x280   :  { %v171_v45 = vadd.f32 %v2880_v41, %v170_v44 }
 0x281   :  { %v106_v28 = vsel %vm105_vm4, %v2878_v21, %v102_v25  ;;  %v2738_v21 = vld [vmem:[%s3694_s2 + $0xd4] sm:$0xf0]  ;;  %v2145_v25 = vld [vmem:[%s3694_s2 + $0xd8] sm:$0xf0] }
 0x282   :  { %v111_v30 = vsel %vm108_vm5, %v110_v29, %v106_v28  ;;  %v3000_v46 = vsel %vm172_vm6, %v2880_v41, %v171_v45  ;;  %v2144_v23 = vor.u32 %v2738_v21, %v2143_v20  ;;  %v2148_v28 = vor.u32 %v2730_v24, %v2145_v25  ;;  %v2721_v29 = vld [vmem:[%s3694_s2 + $0x4c] sm:$0xf0]  ;;  %v2734_v20 = vld [vmem:[%s3694_s2 + $0xbc] sm:$0xf] }
 0x283   :  { %v112_v32 = vmul.f32 %v2876_v15, %v111_v30  ;;  %v2737_v15 = vld [vmem:[%s3694_s2 + $0xcc] sm:$0xf0]  ;;  %v2713_v30 = vld [vmem:[%s3694_s2 + $0x14] sm:$0xf]  ;;  %v2177_v21 = vld [vmem:[%s3694_s2 + $0xf8] sm:$0xf0] }
 0x284   :  { %v2136_v18 = vor.u32 %v2737_v15, %v2135_v14  ;;  %513 = vmatpush.bf16.msra.mxu0 %v2144_v23  ;;  %v2167_v14 = vld [vmem:[%s3694_s2 + $0xb0] sm:$0xf] }
 0x285   :  { %v2741_v15 = vld [vmem:[%s3694_s2 + $0xec] sm:$0xf0] }
 0x286   :  { %v2103_v24 = vld [vmem:[%s3694_s2 + $0x30] sm:$0xf] }
 0x287   :  { %v2725_v25 = vld [vmem:[%s3694_s2 + $0x6c] sm:$0xf0] }
 0x289   :  { %v114_v31 = vpop.permute.xlu1 %113 }
 0x28a   :  { %134 = vmatpush.msra.mxu2 %v114_v31  ;;  %v2072_v31 = vor.u32 %v2721_v29, %v2071_v26  ;;  %v2105_v29 = vld [vmem:[%s3694_s2 + $0x70] sm:$0xf0] }
 0x28b   :  { %2051 = vmatmul.msk.f32.vlgmr.msra.gmra.mxu2 %vm88_vm1, %v112_v32  ;;  %v2073_v32 = vld [vmem:[%s3694_s2 + $0x50] sm:$0xf0] }
 0x28c   :  { %435 = vmatpush.bf16.msrb.mxu2 %v2120_v55  ;;  %v2731_v55 = vld [vmem:[%s3694_s2 + $0xa4] sm:$0xf] }
 0x28d   :  { %v2156_v62 = vor.u32 %v2731_v55, %v2153_v56  ;;  %v2771_v55 = vld [vmem:[%s3696_s4 + $0xe0] sm:$0xff]  ;;  %v2754_v56 = vld [vmem:[%s3696_s4 + $0x58] sm:$0xff] }
 0x290   :  { %436 = vmatpush.bf16.msrb.mxu2 %v2056_v3  ;;  %v2715_v3 = vld [vmem:[%s3694_s2 + $0x24] sm:$0xf] }
 0x294   :  { %487 = vmatpush.bf16.msra.mxu2 %v2136_v18  ;;  %v2175_v18 = vld [vmem:[%s3694_s2 + $0xb8] sm:$0xf] }
 0x295   :  { %v2176_v26 = vor.u32 %v2742_v19, %v2175_v18  ;;  %v2780_v18 = vld [vmem:[%s3696_s4 + $0x128] sm:$0xff] }
 0x296   :  { %v2804_v19 = vld [vmem:[%s3696_s4 + $0x1e8] sm:$0xff] }
 0x298   :  { %488 = vmatpush.bf16.msra.mxu2 %v2072_v31  ;;  %v2726_v31 = vld [vmem:[%s3694_s2 + $0x74] sm:$0xf0] }
 0x30e   :  { %v136_v34 = vpop.f32.mrf.mxu2 }
 0x30f   :  { %2052 = vmatmul.msk.f32.vlgmr.msra.gmra.mxu3 %vm37_vm0, %v136_v34  ;;  %v2722_v34 = vld [vmem:[%s3694_s2 + $0x54] sm:$0xf0] }
 0x310   :  { %526 = vmatpush.bf16.msra.mxu3 %v2148_v28  ;;  %v2717_v28 = vld [vmem:[%s3694_s2 + $0x34] sm:$0xf] }
 0x392   :  { %v160_v36 = vpop.f32.mrf.mxu3 }
 0x393   :  { %v161_v37 = vadd.f32 %v160_v36, %v139_v35  ;;  %v2076_v35 = vor.u32 %v2713_v30, %v2073_v32  ;;  %v2080_v36 = vor.u32 %v2722_v34, %v2079_v33  ;;  %v2111_v30 = vld [vmem:[%s3694_s2 + $0x38] sm:$0xf]  ;;  %v2718_v32 = vld [vmem:[%s3694_s2 + $0x3c] sm:$0xf]  ;;  %v2104_v34 = vor.u32 %v2725_v25, %v2103_v24 }
 0x394   :  { %v2113_v33 = vld [vmem:[%s3694_s2 + $0x78] sm:$0xf0] }
 0x395   :  { %v163_v38 = vadd.f32 %v161_v37, %v22_v4  ;;  %v2057_v4 = vld [vmem:[%s3694_s2 + $0x40] sm:$0xf0]  ;;  %v2714_v37 = vld [vmem:[%s3694_s2 + $0x1c] sm:$0xf]  ;;  %514 = vmatpush.bf16.msra.mxu0 %v2080_v36  ;;  %v2112_v36 = vor.u32 %v2726_v31, %v2111_v30  ;;  %v2784_v30 = vld [vmem:[%s3696_s4 + $0x148] sm:$0xff] }
 0x396   :  { %v2060_v8 = vor.u32 %v2711_v2, %v2057_v4  ;;  %v2164_v2 = vor.u32 %v2732_v58, %v2161_v59  ;;  %v2089_v4 = vld [vmem:[%s3694_s2 + $0x60] sm:$0xf0]  ;;  %v2770_v58 = vld [vmem:[%s3696_s4 + $0xd8] sm:$0xff]  ;;  %v2753_v59 = vld [vmem:[%s3696_s4 + $0x50] sm:$0xff] }
 0x397   :  { %v164_v39 = vsel %vm37_vm0, %v163_v38, 0.0  ;;  %v2092_v11 = vor.u32 %v2715_v3, %v2089_v4  ;;  %v2751_v3 = vld [vmem:[%s3696_s4 + $0x40] sm:$0xff]  ;;  %v2786_v24 = vld [vmem:[%s3696_s4 + $0x158] sm:$0xff]  ;;  %v2792_v31 = vld [vmem:[%s3696_s4 + $0x188] sm:$0xff] }
 0x398   :  { %165 = vadd.xlane.f32.xlu2 %v164_v39  ;;  %449 = vmatpush.bf16.msrb.mxu1 %v2060_v8  ;;  %v2716_v8 = vld [vmem:[%s3694_s2 + $0x2c] sm:$0xf]  ;;  %v2759_v4 = vld [vmem:[%s3696_s4 + $0x80] sm:$0xff]  ;;  %v2794_v25 = vld [vmem:[%s3696_s4 + $0x198] sm:$0xff] }
 0x39c   :  { %500 = vmatpush.bf16.msra.mxu1 %v2140_v22  ;;  %v2168_v22 = vor.u32 %v2741_v15, %v2167_v14  ;;  %v2781_v14 = vld [vmem:[%s3696_s4 + $0x130] sm:$0xff] }
 0x39d   :  { %v2805_v15 = vld [vmem:[%s3696_s4 + $0x1f0] sm:$0xff] }
 0x3a0   :  { %501 = vmatpush.bf16.msra.mxu1 %v2076_v35  ;;  %v2108_v35 = vor.u32 %v2717_v28, %v2105_v29  ;;  %v2778_v28 = vld [vmem:[%s3696_s4 + $0x118] sm:$0xff] }
 0x3a1   :  { %v2802_v29 = vld [vmem:[%s3696_s4 + $0x1d8] sm:$0xff] }
 0x40b   :  { %v166_v47 = vpop.xlane.xlu2 %165 }
 0x40c   :  { %v174_v48 = vmul.f32 %v3000_v46, %v166_v47  ;;  %v193_v47 = vperm.slane %v2977_v5, 2 }
 0x40e   :  { %v3003_v49 = vsub.f32 %v163_v38, %v174_v48  ;;  %v2081_v38 = vld [vmem:[%s3694_s2 + $0x58] sm:$0xf0] }
 0x40f   :  { %v2084_v39 = vor.u32 %v2714_v37, %v2081_v38  ;;  %v2116_v37 = vor.u32 %v2718_v32, %v2113_v33  ;;  %v2758_v38 = vld [vmem:[%s3696_s4 + $0x78] sm:$0xff]  ;;  %v2777_v32 = vld [vmem:[%s3696_s4 + $0x110] sm:$0xff] }
 0x410   :  { %v176_v50 = vmul.f32 %v3003_v49, %v3003_v49  ;;  %v2801_v33 = vld [vmem:[%s3696_s4 + $0x1d0] sm:$0xff] }
 0x411   :  { %527 = vmatpush.bf16.msra.mxu3 %v2084_v39  ;;  %v2766_v39 = vld [vmem:[%s3696_s4 + $0xb8] sm:$0xff] }
 0x412   :  { %v177_v51 = vsel %vm37_vm0, %v176_v50, 0.0  ;;  %v195_v50 = vperm.slane %v2977_v5, 3  ;;  %v2159_v5 = vld [vmem:[%s3694_s2 + $0xa8] sm:$0xf] }
 0x413   :  { %178 = vadd.xlane.f32.xlu2 %v177_v51  ;;  %v2160_v1 = vor.u32 %v2740_v57, %v2159_v5  ;;  %v2762_v5 = vld [vmem:[%s3696_s4 + $0x98] sm:$0xff] }
 0x414   :  { %v2746_v57 = vld [vmem:[%s3696_s4 + $0x18] sm:$0xff] }
 0x486   :  { %v179_v13 = vpop.xlane.xlu2 %178 }
 0x487   :  { %v180_v17 = vmul.f32 %v179_v13, %v3000_v46  ;;  %v2100_v13 = vor.u32 %v2716_v8, %v2097_v9  ;;  %v2743_v8 = vld [vmem:[%s3696_s4] sm:$0xff] }
 0x488   :  { %v2767_v9 = vld [vmem:[%s3696_s4 + $0xc0] sm:$0xff] }
 0x489   :  { %v181_v27 = vadd.f32 1e-05, %v180_v17  ;;  %v2169_v17 = vld [vmem:[%s3694_s2 + $0xf0] sm:$0xf0] }
 0x48a   :  { %v2172_v23 = vor.u32 %v2733_v16, %v2169_v17  ;;  %v2788_v16 = vld [vmem:[%s3696_s4 + $0x168] sm:$0xff] }
 0x48b   :  { %2881 = vrsqrt.f32 %v181_v27  ;;  %vm188_vm8 = vweird.f32 %v181_v27  ;;  %v2796_v17 = vld [vmem:[%s3696_s4 + $0x1a8] sm:$0xff] }
 0x491   :  { %v2882_v40 = vpop.eup %2881 }
 0x492   :  { %v183_v41 = vmul.f32 %v2882_v40, %v181_v27  ;;  %vm189_vm7 = vweird.f32 %v2882_v40  ;;  %v2180_v27 = vor.u32 %v2734_v20, %v2177_v21  ;;  %v2787_v20 = vld [vmem:[%s3696_s4 + $0x160] sm:$0xff] }
 0x493   :  { %vm190_vm9 = vmor %vm188_vm8, %vm189_vm7  ;;  %v2795_v21 = vld [vmem:[%s3696_s4 + $0x1a0] sm:$0xff] }
 0x494   :  { %v184_v42 = vmul.f32 %v2882_v40, %v183_v41  ;;  %v2774_v41 = vld [vmem:[%s3696_s4 + $0xf8] sm:$0xff] }
 0x496   :  { %v185_v43 = vmul.f32 0.5, %v184_v42  ;;  %v2757_v42 = vld [vmem:[%s3696_s4 + $0x70] sm:$0xff] }
 0x498   :  { %v186_v44 = vsub.f32 1.5, %v185_v43  ;;  %v2765_v43 = vld [vmem:[%s3696_s4 + $0xb0] sm:$0xff] }
 0x49a   :  { %v187_v45 = vmul.f32 %v2882_v40, %v186_v44  ;;  %v2749_v44 = vld [vmem:[%s3696_s4 + $0x30] sm:$0xff] }
 0x49c   :  { %v191_v48 = vsel %vm190_vm9, %v2882_v40, %v187_v45  ;;  %v2750_v40 = vld [vmem:[%s3696_s4 + $0x38] sm:$0xff]  ;;  %v2773_v45 = vld [vmem:[%s3696_s4 + $0xf0] sm:$0xff] }
 0x49d   :  { %v192_v51 = vmul.f32 %v191_v48, %v3003_v49  ;;  %v2764_v48 = vld [vmem:[%s3696_s4 + $0xa8] sm:$0xff] }
 0x49f   :  { %v194_v52 = vmul.f32 %v193_v47, %v192_v51  ;;  %v2756_v47 = vld [vmem:[%s3696_s4 + $0x68] sm:$0xff] }
 0x4a0   :  { %v2772_v51 = vld [vmem:[%s3696_s4 + $0xe8] sm:$0xff] }
 0x4a1   :  { %v3123_v49 = vadd.f32 %v195_v50, %v194_v52  ;;  %v2748_v50 = vld [vmem:[%s3696_s4 + $0x28] sm:$0xff]  ;;  %v2755_v52 = vld [vmem:[%s3696_s4 + $0x60] sm:$0xff] }
 0x4a3   :  { %v3136_v60 = vpack.c.bf16 %v3123_v49, %v3123_v49 }
 0x4a5   :  { %2181 = vmatmul.msk.bf16.vlgmr.msrb.gmra.mxu2 %vm37_vm0, %v3136_v60  ;;  %2182 = vmatmul.msk.bf16.vlgmr.msrb.gmra.mxu1 %vm37_vm0, %v3136_v60 }
 0x4a6   :  { %2183 = vmatmul.msk.bf16.vlgmr.msrb.gmra.mxu0 %vm37_vm0, %v3136_v60  ;;  %2184 = vmatmul.msk.bf16.vlgmr.msrb.gmra.mxu3 %vm37_vm0, %v3136_v60 }
 0x4a7   :  { %539 = vmatpush.bf16.msrb.mxu2 %v2152_v61  ;;  %552 = vmatpush.bf16.msrb.mxu1 %v2156_v62  ;;  %v2761_v61 = vld [vmem:[%s3696_s4 + $0x90] sm:$0xff] }
 0x4a8   :  { %565 = vmatpush.bf16.msrb.mxu0 %v2160_v1  ;;  %578 = vmatpush.bf16.msrb.mxu3 %v2164_v2  ;;  %v2745_v62 = vld [vmem:[%s3696_s4 + $0x10] sm:$0xff]  ;;  %v2744_v1 = vld [vmem:[%s3696_s4 + $0x8] sm:$0xff] }
 0x4a9   :  { %v2768_v2 = vld [vmem:[%s3696_s4 + $0xc8] sm:$0xff] }
 0x4ab   :  { %540 = vmatpush.bf16.msrb.mxu2 %v2088_v10  ;;  %553 = vmatpush.bf16.msrb.mxu1 %v2092_v11  ;;  %v2782_v10 = vld [vmem:[%s3696_s4 + $0x138] sm:$0xff] }
 0x4ac   :  { %566 = vmatpush.bf16.msrb.mxu0 %v2096_v12  ;;  %579 = vmatpush.bf16.msrb.mxu3 %v2100_v13  ;;  %v2806_v11 = vld [vmem:[%s3696_s4 + $0x1f8] sm:$0xff]  ;;  %v2789_v12 = vld [vmem:[%s3696_s4 + $0x170] sm:$0xff] }
 0x4ad   :  { %v2797_v13 = vld [vmem:[%s3696_s4 + $0x1b0] sm:$0xff] }
 0x4b5   :  { %2185 = vmatmul.msk.bf16.vlgmr.msra.gmra.mxu2 %vm37_vm0, %v3136_v60  ;;  %2186 = vmatmul.msk.bf16.vlgmr.msra.gmra.mxu1 %vm37_vm0, %v3136_v60 }
 0x4b6   :  { %2187 = vmatmul.msk.bf16.vlgmr.msra.gmra.mxu0 %vm37_vm0, %v3136_v60  ;;  %2188 = vmatmul.msk.bf16.vlgmr.msra.gmra.mxu3 %vm37_vm0, %v3136_v60 }
 0x4b7   :  { %591 = vmatpush.bf16.msra.mxu2 %v2168_v22  ;;  %604 = vmatpush.bf16.msra.mxu1 %v2172_v23  ;;  %v2779_v22 = vld [vmem:[%s3696_s4 + $0x120] sm:$0xff] }
 0x4b8   :  { %617 = vmatpush.bf16.msra.mxu0 %v2176_v26  ;;  %630 = vmatpush.bf16.msra.mxu3 %v2180_v27  ;;  %v2803_v23 = vld [vmem:[%s3696_s4 + $0x1e0] sm:$0xff]  ;;  %v2785_v26 = vld [vmem:[%s3696_s4 + $0x150] sm:$0xff] }
 0x4b9   :  { %v2793_v27 = vld [vmem:[%s3696_s4 + $0x190] sm:$0xff] }
 0x4bb   :  { %592 = vmatpush.bf16.msra.mxu2 %v2104_v34  ;;  %605 = vmatpush.bf16.msra.mxu1 %v2108_v35  ;;  %v2783_v34 = vld [vmem:[%s3696_s4 + $0x140] sm:$0xff] }
 0x4bc   :  { %618 = vmatpush.bf16.msra.mxu0 %v2112_v36  ;;  %631 = vmatpush.bf16.msra.mxu3 %v2116_v37  ;;  %v2791_v35 = vld [vmem:[%s3696_s4 + $0x180] sm:$0xff]  ;;  %v2776_v36 = vld [vmem:[%s3696_s4 + $0x108] sm:$0xff] }
 0x4bd   :  { %v2800_v37 = vld [vmem:[%s3696_s4 + $0x1c8] sm:$0xff] }
 0x4c5   :  { %2189 = vmatmul.msk.bf16.vlgmr.msrb.gmra.mxu2 %vm37_vm0, %v3136_v60  ;;  %2190 = vmatmul.msk.bf16.vlgmr.msrb.gmra.mxu1 %vm37_vm0, %v3136_v60 }
 0x4c6   :  { %2191 = vmatmul.msk.bf16.vlgmr.msrb.gmra.mxu0 %vm37_vm0, %v3136_v60  ;;  %2192 = vmatmul.msk.bf16.vlgmr.msrb.gmra.mxu3 %vm37_vm0, %v3136_v60 }
 0x4c7   :  { %1707 = vmatpush.bf16.msrb.mxu1 %v2758_v38  ;;  %1720 = vmatpush.bf16.msrb.mxu0 %v2766_v39  ;;  %v2775_v38 = vld [vmem:[%s3696_s4 + $0x100] sm:$0xff] }
 0x4c8   :  { %1694 = vmatpush.bf16.msrb.mxu2 %v2750_v40  ;;  %1733 = vmatpush.bf16.msrb.mxu3 %v2774_v41  ;;  %v2799_v39 = vld [vmem:[%s3696_s4 + $0x1c0] sm:$0xff] }
 0x4c9   :  { %v3437_v40 = vld [vmem:[%s3695_s3] sm:$0xff] }
 0x4ca   :  { %v235_v41 = vperm.slane %v3437_v40, 1 }
 0x4cb   :  { %1708 = vmatpush.bf16.msrb.mxu1 %v2757_v42  ;;  %1721 = vmatpush.bf16.msrb.mxu0 %v2765_v43  ;;  %v236_v42 = vperm.slane %v3437_v40, 2 }
 0x4cc   :  { %1695 = vmatpush.bf16.msrb.mxu2 %v2749_v44  ;;  %1734 = vmatpush.bf16.msrb.mxu3 %v2773_v45 }
 0x4cf   :  { %1709 = vmatpush.bf16.msrb.mxu1 %v2756_v47  ;;  %1722 = vmatpush.bf16.msrb.mxu0 %v2764_v48 }
 0x4d0   :  { %1696 = vmatpush.bf16.msrb.mxu2 %v2748_v50  ;;  %1735 = vmatpush.bf16.msrb.mxu3 %v2772_v51  ;;  %v234_v50 = vperm.slane %v3437_v40, 0 }
 0x4d3   :  { %1710 = vmatpush.bf16.msrb.mxu1 %v2755_v52  ;;  %1723 = vmatpush.bf16.msrb.mxu0 %v2763_v53  ;;  %v237_v52 = vperm.slane %v3437_v40, 3  ;;  %v2822_v53 = vld [vmem:[%s3696_s4 + $0x278] sm:$0xff] }
 0x4d4   :  { %1697 = vmatpush.bf16.msrb.mxu2 %v2747_v54  ;;  %1736 = vmatpush.bf16.msrb.mxu3 %v2771_v55  ;;  %v2830_v55 = vld [vmem:[%s3696_s4 + $0x2b8] sm:$0xff] }
 0x4d5   :  { %2193 = vmatmul.msk.bf16.vlgmr.msra.gmra.mxu2 %vm37_vm0, %v3136_v60  ;;  %2194 = vmatmul.msk.bf16.vlgmr.msra.gmra.mxu1 %vm37_vm0, %v3136_v60 }
 0x4d6   :  { %2195 = vmatmul.msk.bf16.vlgmr.msra.gmra.mxu0 %vm37_vm0, %v3136_v60  ;;  %2196 = vmatmul.msk.bf16.vlgmr.msra.gmra.mxu3 %vm37_vm0, %v3136_v60  ;;  %v2769_v60 = vld [vmem:[%s3696_s4 + $0xd0] sm:$0xff] }
 0x4d7   :  { %1711 = vmatpush.bf16.msrb.mxu1 %v2754_v56  ;;  %1724 = vmatpush.bf16.msrb.mxu0 %v2762_v5 }
 0x4d8   :  { %1698 = vmatpush.bf16.msrb.mxu2 %v2746_v57  ;;  %1737 = vmatpush.bf16.msrb.mxu3 %v2770_v58 }
 0x4db   :  { %1712 = vmatpush.bf16.msrb.mxu1 %v2753_v59  ;;  %1725 = vmatpush.bf16.msrb.mxu0 %v2761_v61 }
 0x4dc   :  { %1699 = vmatpush.bf16.msrb.mxu2 %v2745_v62  ;;  %1738 = vmatpush.bf16.msrb.mxu3 %v2769_v60  ;;  %v2821_v62 = vld [vmem:[%s3696_s4 + $0x270] sm:$0xff] }
 0x4df   :  { %1713 = vmatpush.bf16.msrb.mxu1 %v2752_v63  ;;  %1726 = vmatpush.bf16.msrb.mxu0 %v2760_v0  ;;  %v2829_v0 = vld [vmem:[%s3696_s4 + $0x2b0] sm:$0xff] }
 0x4e0   :  { %1700 = vmatpush.bf16.msrb.mxu2 %v2744_v1  ;;  %1739 = vmatpush.bf16.msrb.mxu3 %v2768_v2  ;;  %v2814_v2 = vld [vmem:[%s3696_s4 + $0x238] sm:$0xff] }
 0x4e3   :  { %1714 = vmatpush.bf16.msrb.mxu1 %v2751_v3  ;;  %1727 = vmatpush.bf16.msrb.mxu0 %v2759_v4  ;;  %v2838_v4 = vld [vmem:[%s3696_s4 + $0x2f8] sm:$0xff] }
 0x4e4   :  { %1701 = vmatpush.bf16.msrb.mxu2 %v2743_v8  ;;  %1740 = vmatpush.bf16.msrb.mxu3 %v2767_v9  ;;  %v2828_v8 = vld [vmem:[%s3696_s4 + $0x2a8] sm:$0xff]  ;;  %v239_v9 = vperm.slane %v3437_v40, 5 }
 0x4e7   :  { %1759 = vmatpush.bf16.msra.mxu1 %v2790_v6  ;;  %1772 = vmatpush.bf16.msra.mxu0 %v2798_v7  ;;  %v2820_v7 = vld [vmem:[%s3696_s4 + $0x268] sm:$0xff] }
 0x4e8   :  { %1746 = vmatpush.bf16.msra.mxu2 %v2782_v10  ;;  %1785 = vmatpush.bf16.msra.mxu3 %v2806_v11  ;;  %v240_v11 = vperm.slane %v3437_v40, 6 }
 0x4eb   :  { %1760 = vmatpush.bf16.msra.mxu1 %v2789_v12  ;;  %1773 = vmatpush.bf16.msra.mxu0 %v2797_v13  ;;  %v2813_v12 = vld [vmem:[%s3696_s4 + $0x230] sm:$0xff] }
 0x4ec   :  { %1747 = vmatpush.bf16.msra.mxu2 %v2781_v14  ;;  %1786 = vmatpush.bf16.msra.mxu3 %v2805_v15  ;;  %v2837_v14 = vld [vmem:[%s3696_s4 + $0x2f0] sm:$0xff] }
 0x4ef   :  { %1761 = vmatpush.bf16.msra.mxu1 %v2788_v16  ;;  %1774 = vmatpush.bf16.msra.mxu0 %v2796_v17  ;;  %v2819_v16 = vld [vmem:[%s3696_s4 + $0x260] sm:$0xff] }
 0x4f0   :  { %1748 = vmatpush.bf16.msra.mxu2 %v2780_v18  ;;  %1787 = vmatpush.bf16.msra.mxu3 %v2804_v19  ;;  %v2827_v19 = vld [vmem:[%s3696_s4 + $0x2a0] sm:$0xff] }
 0x4f3   :  { %1762 = vmatpush.bf16.msra.mxu1 %v2787_v20  ;;  %1775 = vmatpush.bf16.msra.mxu0 %v2795_v21  ;;  %v2812_v21 = vld [vmem:[%s3696_s4 + $0x228] sm:$0xff] }
 0x4f4   :  { %1749 = vmatpush.bf16.msra.mxu2 %v2779_v22  ;;  %1788 = vmatpush.bf16.msra.mxu3 %v2803_v23  ;;  %v2836_v23 = vld [vmem:[%s3696_s4 + $0x2e8] sm:$0xff] }
 0x4f7   :  { %1763 = vmatpush.bf16.msra.mxu1 %v2786_v24  ;;  %1776 = vmatpush.bf16.msra.mxu0 %v2794_v25  ;;  %v238_v24 = vperm.slane %v3437_v40, 4 }
 0x4f8   :  { %1750 = vmatpush.bf16.msra.mxu2 %v2778_v28  ;;  %1789 = vmatpush.bf16.msra.mxu3 %v2802_v29  ;;  %v2826_v29 = vld [vmem:[%s3696_s4 + $0x298] sm:$0xff] }
 0x4fb   :  { %1764 = vmatpush.bf16.msra.mxu1 %v2785_v26  ;;  %1777 = vmatpush.bf16.msra.mxu0 %v2793_v27  ;;  %v241_v26 = vperm.slane %v3437_v40, 7  ;;  %v2818_v27 = vld [vmem:[%s3696_s4 + $0x258] sm:$0xff] }
 0x4fc   :  { %1751 = vmatpush.bf16.msra.mxu2 %v2777_v32  ;;  %1790 = vmatpush.bf16.msra.mxu3 %v2801_v33  ;;  %v2811_v32 = vld [vmem:[%s3696_s4 + $0x220] sm:$0xff] }
 0x4ff   :  { %1765 = vmatpush.bf16.msra.mxu1 %v2784_v30  ;;  %1778 = vmatpush.bf16.msra.mxu0 %v2792_v31 }
 0x500   :  { %1752 = vmatpush.bf16.msra.mxu2 %v2776_v36  ;;  %1791 = vmatpush.bf16.msra.mxu3 %v2800_v37 }
 0x503   :  { %1766 = vmatpush.bf16.msra.mxu1 %v2783_v34  ;;  %1779 = vmatpush.bf16.msra.mxu0 %v2791_v35  ;;  %v2835_v35 = vld [vmem:[%s3696_s4 + $0x2e0] sm:$0xff] }
 0x504   :  { %1753 = vmatpush.bf16.msra.mxu2 %v2775_v38  ;;  %1792 = vmatpush.bf16.msra.mxu3 %v2799_v39  ;;  %v2817_v38 = vld [vmem:[%s3696_s4 + $0x250] sm:$0xff] }
 0x522   :  { %v451_v43 = vpop.f32.mrf.mxu1 }
 0x523   :  { %v452_v44 = vadd.f32 %v451_v43, %v235_v41  ;;  %v464_v45 = vpop.f32.mrf.mxu0  ;;  %v2825_v41 = vld [vmem:[%s3696_s4 + $0x290] sm:$0xff]  ;;  %v2810_v43 = vld [vmem:[%s3696_s4 + $0x218] sm:$0xff] }
 0x524   :  { %v465_v47 = vadd.f32 %v464_v45, %v236_v42 }
 0x525   :  { %v638_v48 = vmax.f32 %v452_v44, 0.0  ;;  %v3513_v44 = vld [vmem:[%s3695_s3 + $0x8] sm:$0xff] }
 0x526   :  { %v639_v51 = vmax.f32 %v465_v47, 0.0  ;;  %v2834_v47 = vld [vmem:[%s3696_s4 + $0x2d8] sm:$0xff] }
 0x527   :  { %v654_v54 = vpack.c.bf16 %v638_v48, %v638_v48 }
 0x528   :  { %v655_v56 = vpack.c.bf16 %v639_v51, %v639_v51  ;;  %v438_v5 = vpop.f32.mrf.mxu2  ;;  %v2824_v51 = vld [vmem:[%s3696_s4 + $0x288] sm:$0xff] }
 0x529   :  { %v439_v57 = vadd.f32 %v438_v5, %v234_v50  ;;  %v477_v58 = vpop.f32.mrf.mxu3  ;;  %1715 = vmatmul.bf16.vlgmr.msrb.gmra.mxu1 %v654_v54  ;;  %v2816_v50 = vld [vmem:[%s3696_s4 + $0x248] sm:$0xff]  ;;  %v244_v54 = vperm.slane %v3513_v44, 2  ;;  %v2833_v5 = vld [vmem:[%s3696_s4 + $0x2d0] sm:$0xff] }
 0x52a   :  { %v478_v59 = vadd.f32 %v477_v58, %v237_v52  ;;  %1728 = vmatmul.bf16.vlgmr.msrb.gmra.mxu0 %v655_v56  ;;  %1811 = vmatpush.bf16.msrb.mxu1 %v2822_v53  ;;  %v453_v61 = vpop.f32.mrf.mxu1  ;;  %v243_v52 = vperm.slane %v3513_v44, 1  ;;  %v2815_v58 = vld [vmem:[%s3696_s4 + $0x240] sm:$0xff] }
 0x52b   :  { %v637_v60 = vmax.f32 %v439_v57, 0.0  ;;  %1824 = vmatpush.bf16.msrb.mxu0 %v2830_v55  ;;  %v466_v63 = vpop.f32.mrf.mxu0  ;;  %v2809_v55 = vld [vmem:[%s3696_s4 + $0x210] sm:$0xff] }
 0x52c   :  { %v640_v1 = vmax.f32 %v478_v59, 0.0 }
 0x52d   :  { %v653_v3 = vpack.c.bf16 %v637_v60, %v637_v60  ;;  %v2854_v60 = vld [vmem:[%s3696_s4 + $0x378] sm:$0xff] }
 0x52e   :  { %v656_v6 = vpack.c.bf16 %v640_v1, %v640_v1  ;;  %1812 = vmatpush.bf16.msrb.mxu1 %v2821_v62  ;;  %v2823_v62 = vld [vmem:[%s3696_s4 + $0x280] sm:$0xff]  ;;  %v2808_v1 = vld [vmem:[%s3696_s4 + $0x208] sm:$0xff] }
 0x52f   :  { %1825 = vmatpush.bf16.msrb.mxu0 %v2829_v0  ;;  %1702 = vmatmul.bf16.vlgmr.msrb.gmra.mxu2 %v653_v3  ;;  %v2862_v0 = vld [vmem:[%s3696_s4 + $0x3b8] sm:$0xff]  ;;  %v2832_v3 = vld [vmem:[%s3696_s4 + $0x2c8] sm:$0xff] }
 0x530   :  { %1741 = vmatmul.bf16.vlgmr.msrb.gmra.mxu3 %v656_v6  ;;  %1798 = vmatpush.bf16.msrb.mxu2 %v2814_v2  ;;  %v440_v10 = vpop.f32.mrf.mxu2 }
 0x531   :  { %1837 = vmatpush.bf16.msrb.mxu3 %v2838_v4  ;;  %v479_v13 = vpop.f32.mrf.mxu3  ;;  %v242_v4 = vperm.slane %v3513_v44, 0 }
 0x532   :  { %1813 = vmatpush.bf16.msrb.mxu1 %v2820_v7  ;;  %v503_v15 = vpop.f32.mrf.mxu1  ;;  %v245_v7 = vperm.slane %v3513_v44, 3  ;;  %v2807_v13 = vld [vmem:[%s3696_s4 + $0x200] sm:$0xff] }
 0x533   :  { %1826 = vmatpush.bf16.msrb.mxu0 %v2828_v8  ;;  %v504_v17 = vadd.f32 %v503_v15, %v239_v9  ;;  %v516_v18 = vpop.f32.mrf.mxu0  ;;  %v2853_v9 = vld [vmem:[%s3696_s4 + $0x370] sm:$0xff] }
 0x534   :  { %v517_v20 = vadd.f32 %v516_v18, %v240_v11  ;;  %1799 = vmatpush.bf16.msrb.mxu2 %v2813_v12  ;;  %v2861_v12 = vld [vmem:[%s3696_s4 + $0x3b0] sm:$0xff] }
 0x535   :  { %v642_v22 = vmax.f32 %v504_v17, 0.0  ;;  %1838 = vmatpush.bf16.msrb.mxu3 %v2837_v14  ;;  %v2846_v17 = vld [vmem:[%s3696_s4 + $0x338] sm:$0xff] }
 0x536   :  { %v643_v25 = vmax.f32 %v517_v20, 0.0  ;;  %1814 = vmatpush.bf16.msrb.mxu1 %v2819_v16  ;;  %v2831_v16 = vld [vmem:[%s3696_s4 + $0x2c0] sm:$0xff]  ;;  %v2870_v20 = vld [vmem:[%s3696_s4 + $0x3f8] sm:$0xff] }
 0x537   :  { %v658_v28 = vpack.c.bf16 %v642_v22, %v642_v22  ;;  %1827 = vmatpush.bf16.msrb.mxu0 %v2827_v19 }
 0x538   :  { %v659_v30 = vpack.c.bf16 %v643_v25, %v643_v25  ;;  %1800 = vmatpush.bf16.msrb.mxu2 %v2812_v21  ;;  %v490_v31 = vpop.f32.mrf.mxu2  ;;  %v2860_v25 = vld [vmem:[%s3696_s4 + $0x3a8] sm:$0xff] }
 0x539   :  { %1839 = vmatpush.bf16.msrb.mxu3 %v2836_v23  ;;  %v491_v33 = vadd.f32 %v490_v31, %v238_v24  ;;  %v529_v34 = vpop.f32.mrf.mxu3  ;;  %1767 = vmatmul.bf16.vlgmr.msra.gmra.mxu1 %v658_v28  ;;  %v2852_v23 = vld [vmem:[%s3696_s4 + $0x368] sm:$0xff] }
 0x53a   :  { %v530_v36 = vadd.f32 %v529_v34, %v241_v26  ;;  %1780 = vmatmul.bf16.vlgmr.msra.gmra.mxu0 %v659_v30  ;;  %1815 = vmatpush.bf16.msrb.mxu1 %v2818_v27  ;;  %v505_v37 = vpop.f32.mrf.mxu1  ;;  %v2845_v27 = vld [vmem:[%s3696_s4 + $0x330] sm:$0xff]  ;;  %v2851_v30 = vld [vmem:[%s3696_s4 + $0x360] sm:$0xff]  ;;  %v2844_v34 = vld [vmem:[%s3696_s4 + $0x328] sm:$0xff] }
 0x53b   :  { %v641_v39 = vmax.f32 %v491_v33, 0.0  ;;  %1828 = vmatpush.bf16.msrb.mxu0 %v2826_v29  ;;  %v518_v40 = vpop.f32.mrf.mxu0  ;;  %v2869_v29 = vld [vmem:[%s3696_s4 + $0x3f0] sm:$0xff] }
 0x53c   :  { %v644_v42 = vmax.f32 %v530_v36, 0.0  ;;  %1801 = vmatpush.bf16.msrb.mxu2 %v2811_v32  ;;  %v2859_v32 = vld [vmem:[%s3696_s4 + $0x3a0] sm:$0xff]  ;;  %v2868_v36 = vld [vmem:[%s3696_s4 + $0x3e8] sm:$0xff] }
 0x53d   :  { %v657_v45 = vpack.c.bf16 %v641_v39, %v641_v39  ;;  %1840 = vmatpush.bf16.msrb.mxu3 %v2835_v35  ;;  %v2858_v39 = vld [vmem:[%s3696_s4 + $0x398] sm:$0xff]  ;;  %v2843_v40 = vld [vmem:[%s3696_s4 + $0x320] sm:$0xff] }
 0x53e   :  { %v660_v48 = vpack.c.bf16 %v644_v42, %v644_v42  ;;  %1816 = vmatpush.bf16.msrb.mxu1 %v2817_v38  ;;  %v2850_v38 = vld [vmem:[%s3696_s4 + $0x358] sm:$0xff]  ;;  %v2849_v42 = vld [vmem:[%s3696_s4 + $0x350] sm:$0xff] }
 0x53f   :  { %1829 = vmatpush.bf16.msrb.mxu0 %v2825_v41  ;;  %1754 = vmatmul.bf16.vlgmr.msra.gmra.mxu2 %v657_v45  ;;  %v2867_v41 = vld [vmem:[%s3696_s4 + $0x3e0] sm:$0xff] }
 0x540   :  { %1793 = vmatmul.bf16.vlgmr.msra.gmra.mxu3 %v660_v48  ;;  %1802 = vmatpush.bf16.msrb.mxu2 %v2810_v43  ;;  %v492_v53 = vpop.f32.mrf.mxu2  ;;  %v247_v43 = vperm.slane %v3513_v44, 5  ;;  %v248_v48 = vperm.slane %v3513_v44, 6 }
 0x541   :  { %1841 = vmatpush.bf16.msrb.mxu3 %v2834_v47  ;;  %v531_v56 = vpop.f32.mrf.mxu3  ;;  %v2857_v47 = vld [vmem:[%s3696_s4 + $0x390] sm:$0xff]  ;;  %v2866_v53 = vld [vmem:[%s3696_s4 + $0x3d8] sm:$0xff] }
 0x542   :  { %1817 = vmatpush.bf16.msrb.mxu1 %v2816_v50  ;;  %v555_v57 = vpop.f32.mrf.mxu1 }
 0x543   :  { %1830 = vmatpush.bf16.msrb.mxu0 %v2824_v51  ;;  %v556_v59 = vadd.f32 %v555_v57, %v243_v52  ;;  %v568_v61 = vpop.f32.mrf.mxu0  ;;  %v2842_v51 = vld [vmem:[%s3696_s4 + $0x318] sm:$0xff] }
 0x544   :  { %v569_v63 = vadd.f32 %v568_v61, %v244_v54  ;;  %1803 = vmatpush.bf16.msrb.mxu2 %v2809_v55  ;;  %v2848_v55 = vld [vmem:[%s3696_s4 + $0x348] sm:$0xff]  ;;  %v2865_v61 = vld [vmem:[%s3696_s4 + $0x3d0] sm:$0xff] }
 0x545   :  { %v646_v2 = vmax.f32 %v556_v59, 0.0  ;;  %1842 = vmatpush.bf16.msrb.mxu3 %v2833_v5  ;;  %v2856_v5 = vld [vmem:[%s3696_s4 + $0x388] sm:$0xff]  ;;  %v246_v59 = vperm.slane %v3513_v44, 4 }
 0x546   :  { %v647_v6 = vmax.f32 %v569_v63, 0.0  ;;  %1818 = vmatpush.bf16.msrb.mxu1 %v2815_v58  ;;  %v2841_v58 = vld [vmem:[%s3696_s4 + $0x310] sm:$0xff] }
 0x547   :  { %v662_v8 = vpack.c.bf16 %v646_v2, %v646_v2  ;;  %1831 = vmatpush.bf16.msrb.mxu0 %v2823_v62  ;;  %v249_v62 = vperm.slane %v3513_v44, 7 }
 0x548   :  { %v663_v10 = vpack.c.bf16 %v647_v6, %v647_v6  ;;  %1804 = vmatpush.bf16.msrb.mxu2 %v2808_v1  ;;  %v542_v11 = vpop.f32.mrf.mxu2  ;;  %v2855_v1 = vld [vmem:[%s3696_s4 + $0x380] sm:$0xff]  ;;  %v2864_v6 = vld [vmem:[%s3696_s4 + $0x3c8] sm:$0xff] }
 0x549   :  { %1843 = vmatpush.bf16.msrb.mxu3 %v2832_v3  ;;  %v543_v14 = vadd.f32 %v542_v11, %v242_v4  ;;  %v581_v15 = vpop.f32.mrf.mxu3  ;;  %1819 = vmatmul.bf16.vlgmr.msrb.gmra.mxu1 %v662_v8  ;;  %v2840_v4 = vld [vmem:[%s3696_s4 + $0x308] sm:$0xff] }
 0x54a   :  { %1863 = vmatpush.bf16.msra.mxu1 %v2854_v60  ;;  %v582_v18 = vadd.f32 %v581_v15, %v245_v7  ;;  %1832 = vmatmul.bf16.vlgmr.msrb.gmra.mxu0 %v663_v10  ;;  %v557_v19 = vpop.f32.mrf.mxu1  ;;  %v2847_v60 = vld [vmem:[%s3696_s4 + $0x340] sm:$0xff] }
 0x54b   :  { %1876 = vmatpush.bf16.msra.mxu0 %v2862_v0  ;;  %v645_v21 = vmax.f32 %v543_v14, 0.0  ;;  %v570_v22 = vpop.f32.mrf.mxu0  ;;  %v2839_v10 = vld [vmem:[%s3696_s4 + $0x300] sm:$0xff] }
 0x54c   :  { %v648_v24 = vmax.f32 %v582_v18, 0.0  ;;  %1805 = vmatpush.bf16.msrb.mxu2 %v2807_v13 }
 0x54d   :  { %v661_v26 = vpack.c.bf16 %v645_v21, %v645_v21  ;;  %1844 = vmatpush.bf16.msrb.mxu3 %v2831_v16 }
 0x54e   :  { %1864 = vmatpush.bf16.msra.mxu1 %v2853_v9  ;;  %v664_v28 = vpack.c.bf16 %v648_v24, %v648_v24 }
 0x54f   :  { %1877 = vmatpush.bf16.msra.mxu0 %v2861_v12  ;;  %1806 = vmatmul.bf16.vlgmr.msrb.gmra.mxu2 %v661_v26  ;;  %v2863_v12 = vld [vmem:[%s3696_s4 + $0x3c0] sm:$0xff] }
 0x550   :  { %1850 = vmatpush.bf16.msra.mxu2 %v2846_v17  ;;  %1845 = vmatmul.bf16.vlgmr.msrb.gmra.mxu3 %v664_v28  ;;  %v544_v31 = vpop.f32.mrf.mxu2  ;;  %v3655_v28 = vld [vmem:[%s3693_s1 + $0x20] sm:$0xff] }
 0x551   :  { %1889 = vmatpush.bf16.msra.mxu3 %v2870_v20  ;;  %v583_v33 = vpop.f32.mrf.mxu3 }
 0x552   :  { %1865 = vmatpush.bf16.msra.mxu1 %v2852_v23  ;;  %v607_v35 = vpop.f32.mrf.mxu1 }
 0x553   :  { %1878 = vmatpush.bf16.msra.mxu0 %v2860_v25  ;;  %v620_v37 = vpop.f32.mrf.mxu0  ;;  %v608_v56 = vadd.f32 %v607_v35, %v247_v43 }
 0x554   :  { %1851 = vmatpush.bf16.msra.mxu2 %v2845_v27  ;;  %v621_v57 = vadd.f32 %v620_v37, %v248_v48 }
 0x555   :  { %1890 = vmatpush.bf16.msra.mxu3 %v2869_v29  ;;  %v650_v63 = vmax.f32 %v608_v56, 0.0  ;;  %v925_v29 = vperm.slane %v3655_v28, 6 }
 0x556   :  { %1866 = vmatpush.bf16.msra.mxu1 %v2851_v30  ;;  %v651_v2 = vmax.f32 %v621_v57, 0.0 }
 0x557   :  { %1879 = vmatpush.bf16.msra.mxu0 %v2859_v32  ;;  %v666_v8 = vpack.c.bf16 %v650_v63, %v650_v63 }
 0x558   :  { %1852 = vmatpush.bf16.msra.mxu2 %v2844_v34  ;;  %v594_v45 = vpop.f32.mrf.mxu2  ;;  %v667_v9 = vpack.c.bf16 %v651_v2, %v651_v2 }
 0x559   :  { %1891 = vmatpush.bf16.msra.mxu3 %v2868_v36  ;;  %v633_v50 = vpop.f32.mrf.mxu3  ;;  %v595_v44 = vadd.f32 %v594_v45, %v246_v59 }
 0x55a   :  { %1867 = vmatpush.bf16.msra.mxu1 %v2850_v38  ;;  %v609_v52 = vpop.f32.mrf.mxu1  ;;  %v634_v7 = vadd.f32 %v633_v50, %v249_v62 }
 0x55b   :  { %1880 = vmatpush.bf16.msra.mxu0 %v2858_v39  ;;  %v622_v54 = vpop.f32.mrf.mxu0  ;;  %v649_v11 = vmax.f32 %v595_v44, 0.0 }
 0x55c   :  { %1853 = vmatpush.bf16.msra.mxu2 %v2843_v40  ;;  %v652_v13 = vmax.f32 %v634_v7, 0.0 }
 0x55d   :  { %1892 = vmatpush.bf16.msra.mxu3 %v2867_v41  ;;  %v665_v14 = vpack.c.bf16 %v649_v11, %v649_v11  ;;  %v35_v11 = vld [vmem:[%s3693_s1 + $0x60] sm:$0xff] }
 0x55e   :  { %1868 = vmatpush.bf16.msra.mxu1 %v2849_v42  ;;  %v668_v15 = vpack.c.bf16 %v652_v13, %v652_v13  ;;  %v32_v13 = vld [vmem:[%s3693_s1 + $0x48] sm:$0xff] }
 0x55f   :  { %1881 = vmatpush.bf16.msra.mxu0 %v2857_v47 }
 0x560   :  { %1854 = vmatpush.bf16.msra.mxu2 %v2842_v51  ;;  %v596_v0 = vpop.f32.mrf.mxu2 }
 0x561   :  { %1893 = vmatpush.bf16.msra.mxu3 %v2866_v53  ;;  %v635_v3 = vpop.f32.mrf.mxu3 }
 0x562   :  { %1869 = vmatpush.bf16.msra.mxu1 %v2848_v55 }
 0x563   :  { %1882 = vmatpush.bf16.msra.mxu0 %v2856_v5 }
 0x564   :  { %1855 = vmatpush.bf16.msra.mxu2 %v2841_v58 }
 0x565   :  { %1894 = vmatpush.bf16.msra.mxu3 %v2865_v61 }
 0x566   :  { %1870 = vmatpush.bf16.msra.mxu1 %v2847_v60 }
 0x567   :  { %1883 = vmatpush.bf16.msra.mxu0 %v2855_v1 }
 0x568   :  { %1856 = vmatpush.bf16.msra.mxu2 %v2840_v4 }
 0x569   :  { %1895 = vmatpush.bf16.msra.mxu3 %v2864_v6  ;;  %1871 = vmatmul.bf16.vlgmr.msra.gmra.mxu1 %v666_v8 }
 0x56a   :  { %1884 = vmatmul.bf16.vlgmr.msra.gmra.mxu0 %v667_v9 }
 0x56c   :  { %1857 = vmatpush.bf16.msra.mxu2 %v2839_v10 }
 0x56d   :  { %1896 = vmatpush.bf16.msra.mxu3 %v2863_v12  ;;  %v33_v12 = vld [vmem:[%s3693_s1 + $0x50] sm:$0xff] }
 0x56f   :  { %1858 = vmatmul.bf16.vlgmr.msra.gmra.mxu2 %v665_v14 }
 0x570   :  { %1897 = vmatmul.bf16.vlgmr.msra.gmra.mxu3 %v668_v15  ;;  %1945 = vmatpush.msrb.mxu2 %v35_v11 }
 0x5a6   :  { %v1716_v16 = vpop.f32.mrf.mxu1 }
 0x5a7   :  { %v1729_v17 = vpop.f32.mrf.mxu0 }
 0x5ae   :  { %v1718_v18 = vpop.f32.mrf.mxu1 }
 0x5af   :  { %v1731_v19 = vpop.f32.mrf.mxu0 }
 0x5b2   :  { %v1703_v20 = vpop.f32.mrf.mxu2 }
 0x5b3   :  { %v1742_v21 = vpop.f32.mrf.mxu3  ;;  %v1704_v32 = vadd.f32 %v1703_v20, %v925_v29 }
 0x5b5   :  { %v1717_v35 = vadd.f32 %v1716_v16, %v1704_v32 }
 0x5b6   :  { %v1768_v22 = vpop.f32.mrf.mxu1 }
 0x5b7   :  { %v1781_v23 = vpop.f32.mrf.mxu0  ;;  %v1730_v38 = vadd.f32 %v1729_v17, %v1717_v35 }
 0x5b9   :  { %v1743_v41 = vadd.f32 %v1742_v21, %v1730_v38 }
 0x5ba   :  { %v1705_v24 = vpop.f32.mrf.mxu2 }
 0x5bb   :  { %v1744_v25 = vpop.f32.mrf.mxu3 }
 0x5be   :  { %v1770_v26 = vpop.f32.mrf.mxu1 }
 0x5bf   :  { %v1783_v27 = vpop.f32.mrf.mxu0  ;;  %v1927_v26 = vperm.slane %v3655_v28, 5 }
 0x5c2   :  { %v1755_v30 = vpop.f32.mrf.mxu2 }
 0x5c3   :  { %v1794_v31 = vpop.f32.mrf.mxu3  ;;  %v1756_v45 = vadd.f32 %v1755_v30, %v1743_v41 }
 0x5c5   :  { %v1769_v47 = vadd.f32 %v1768_v22, %v1756_v45 }
 0x5c6   :  { %v1820_v33 = vpop.f32.mrf.mxu1 }
 0x5c7   :  { %v1833_v34 = vpop.f32.mrf.mxu0  ;;  %v1782_v51 = vadd.f32 %v1781_v23, %v1769_v47  ;;  %v1925_v23 = vperm.slane %v3655_v28, 4 }
 0x5c9   :  { %v1795_v52 = vadd.f32 %v1794_v31, %v1782_v51  ;;  %v1929_v31 = vperm.slane %v3655_v28, 7 }
 0x5ca   :  { %v1757_v36 = vpop.f32.mrf.mxu2 }
 0x5cb   :  { %v1796_v37 = vpop.f32.mrf.mxu3 }
 0x5ce   :  { %v1822_v39 = vpop.f32.mrf.mxu1 }
 0x5cf   :  { %v1835_v40 = vpop.f32.mrf.mxu0 }
 0x5d2   :  { %v1807_v42 = vpop.f32.mrf.mxu2 }
 0x5d3   :  { %v1846_v43 = vpop.f32.mrf.mxu3  ;;  %v1808_v53 = vadd.f32 %v1807_v42, %v1795_v52 }
 0x5d5   :  { %v1821_v56 = vadd.f32 %v1820_v33, %v1808_v53 }
 0x5d7   :  { %v1834_v5 = vadd.f32 %v1833_v34, %v1821_v56 }
 0x5d9   :  { %v1847_v59 = vadd.f32 %v1846_v43, %v1834_v5 }
 0x5da   :  { %v1809_v48 = vpop.f32.mrf.mxu2 }
 0x5db   :  { %v1848_v50 = vpop.f32.mrf.mxu3 }
 0x5e6   :  { %v1872_v54 = vpop.f32.mrf.mxu1 }
 0x5e7   :  { %v1885_v55 = vpop.f32.mrf.mxu0 }
 0x5ee   :  { %v1874_v57 = vpop.f32.mrf.mxu1 }
 0x5ef   :  { %v1887_v58 = vpop.f32.mrf.mxu0 }
 0x5f2   :  { %v1859_v61 = vpop.f32.mrf.mxu2 }
 0x5f3   :  { %v1860_v62 = vadd.f32 %v1859_v61, %v1847_v59  ;;  %v1898_v60 = vpop.f32.mrf.mxu3 }
 0x5f5   :  { %v1873_v63 = vadd.f32 %v1872_v54, %v1860_v62 }
 0x5f7   :  { %v1886_v0 = vadd.f32 %v1885_v55, %v1873_v63 }
 0x5f9   :  { %v1899_v1 = vadd.f32 %v1898_v60, %v1886_v0 }
 0x5fa   :  { %v1861_v2 = vpop.f32.mrf.mxu2 }
 0x5fb   :  { %v1900_v3 = vpop.f32.mrf.mxu3  ;;  %v1902_v4 = vadd.f32 %v1899_v1, %v3123_v49  ;;  %v34_v49 = vld [vmem:[%s3693_s1 + $0x58] sm:$0xff]  ;;  %s2927_s1 = smov [#allocation2]  }
 0x5fc   :  { %1946 = vmatpush.msrb.mxu2 %v34_v49  ;;  %s2037_s7 = sshll.u32 %s2927_s1, 4  ;;  %s2038_s7 = int_to_ptr.vmem [resolvable:$true] %s2037_s7 }
 0x5fd   :  { %v1903_v44 = vsel %vm37_vm0, %v1902_v4, 0.0 }
 0x5fe   :  { %1904 = vadd.xlane.f32.xlu2 %v1903_v44  ;;  %1947 = vmatpush.msrb.mxu2 %v33_v12 }
 0x600   :  { %1948 = vmatpush.msrb.mxu2 %v32_v13 }
 0x671   :  { %v1905_v6 = vpop.xlane.xlu2 %1904 }
 0x672   :  { %v1906_v7 = vmul.f32 %v1905_v6, %v3000_v46 }
 0x674   :  { %v1907_v8 = vsub.f32 %v1902_v4, %v1906_v7 }
 0x676   :  { %v1908_v9 = vmul.f32 %v1907_v8, %v1907_v8 }
 0x678   :  { %v1909_v10 = vsel %vm37_vm0, %v1908_v9, 0.0 }
 0x679   :  { %1910 = vadd.xlane.f32.xlu2 %v1909_v10 }
 0x6ec   :  { %v1911_v14 = vpop.xlane.xlu2 %1910 }
 0x6ed   :  { %v1912_v15 = vmul.f32 %v1911_v14, %v3000_v46  ;;  %v1954_v46 = vlaneseq }
 0x6ef   :  { %v1913_v16 = vadd.f32 1e-05, %v1912_v15  ;;  %v1955_v30 = vand.u32 127, %v1954_v46 }
 0x6f1   :  { %2883 = vrsqrt.f32 %v1913_v16  ;;  %vm1920_vm11 = vweird.f32 %v1913_v16  ;;  %vm1957_vm13 = vcmp.ge.s32.totalorder %v1955_v30, 32  ;;  %vm1958_vm14 = vcmp.lt.s32.totalorder %v1955_v30, 36 }
 0x6f2   :  { %vm3679_vm15 = vmand %vm1957_vm13, %vm1958_vm14  ;;  %vm1956_vm1 = vcmp.lt.s32.totalorder %v1955_v30, 32  ;;  %vm1960_vm3 = vcmp.eq.s32.totalorder %v1955_v30, 36 }
 0x6f7   :  { %v2884_v17 = vpop.eup %2883 }
 0x6f8   :  { %v1915_v18 = vmul.f32 %v2884_v17, %v1913_v16  ;;  %vm1921_vm10 = vweird.f32 %v2884_v17 }
 0x6f9   :  { %vm1922_vm12 = vmor %vm1920_vm11, %vm1921_vm10 }
 0x6fa   :  { %v1916_v19 = vmul.f32 %v2884_v17, %v1915_v18 }
 0x6fc   :  { %v1917_v20 = vmul.f32 0.5, %v1916_v19 }
 0x6fe   :  { %v1918_v21 = vsub.f32 1.5, %v1917_v20 }
 0x700   :  { %v1919_v22 = vmul.f32 %v2884_v17, %v1918_v21 }
 0x702   :  { %v1923_v24 = vsel %vm1922_vm12, %v2884_v17, %v1919_v22 }
 0x703   :  { %v1924_v25 = vmul.f32 %v1923_v24, %v1907_v8 }
 0x705   :  { %v1926_v27 = vmul.f32 %v1925_v23, %v1924_v25 }
 0x707   :  { %v1928_v29 = vadd.f32 %v1927_v26, %v1926_v27 }
 0x709   :  { %2709 = vmatmul.msk.f32.vlgmr.msrb.gmra.mxu2 %vm37_vm0, %v1928_v29 }
 0x78c   :  { %v1950_v32 = vpop.f32.mrf.mxu2 }
 0x78d   :  { %v1951_v33 = vadd.f32 %v1950_v32, %v1929_v31 }
 0x78f   :  { %v1953_v35 = vmax.f32 %v1951_v33, 0.0 }
 0x791   :  { %v2710_v36 = vmul.f32 -1.442695, %v1953_v35  ;;  %v1985_v37 = vsel %vm3679_vm15, %v1953_v35, -1e+30  ;;  %v1961_v38 = vsel %vm1956_vm1, %v1953_v35, -1e+30 }
 0x792   :  { %1986 = vmax.xlane.f32.xlu1 %v1985_v37  ;;  %1962 = vmax.xlane.f32.xlu2 %v1961_v38 }
 0x793   :  { %2885 = vpow2.f32 %v2710_v36 }
 0x799   :  { %v2886_v28 = vpop.eup %2885 }
 0x79a   :  { %v2012_v39 = vadd.f32 1.0, %v2886_v28 }
 0x79c   :  { %2887 = vrcp.f32 %v2012_v39  ;;  %v2024_v43 = vand.u32 2147483648, %v2012_v39  ;;  %v2022_v47 = vand.u32 2147483647, %v2012_v39  ;;  %vm2018_vm2 = vweird.f32 %v2012_v39 }
 0x79e   :  { %v2025_v50 = vor.u32 1.1754944e-38, %v2024_v43  ;;  %vm2023_vm5 = vcmp.eq.f32.partialorder %v2022_v47, 8.507059e+37 }
 0x7a2   :  { %v2888_v40 = vpop.eup %2887 }
 0x7a3   :  { %v2014_v41 = vmul.f32 %v2888_v40, %v2012_v39  ;;  %vm2019_vm0 = vweird.f32 %v2888_v40 }
 0x7a4   :  { %vm2020_vm4 = vmor %vm2018_vm2, %vm2019_vm0 }
 0x7a5   :  { %v2015_v42 = vsub.f32 1.0, %v2014_v41 }
 0x7a7   :  { %v2016_v45 = vmul.f32 %v2888_v40, %v2015_v42 }
 0x7a9   :  { %v2017_v48 = vadd.f32 %v2888_v40, %v2016_v45 }
 0x7ab   :  { %v2021_v51 = vsel %vm2020_vm4, %v2888_v40, %v2017_v48 }
 0x7ac   :  { %v2026_v52 = vsel %vm2023_vm5, %v2025_v50, %v2021_v51 }
 0x7ad   :  { %v2028_v53 = vsel %vm1960_vm3, %v2026_v52, 0.0 }
 0x805   :  { %v1963_v54 = vpop.xlane.xlu2 %1962  ;;  %v1987_v55 = vpop.xlane.xlu1 %1986 }
 0x806   :  { %v1964_v56 = vsub.f32 %v1961_v38, %v1963_v54  ;;  %v1988_v57 = vsub.f32 %v1985_v37, %v1987_v55 }
 0x808   :  { %v1965_v5 = vmul.f32 1.442695, %v1964_v56  ;;  %v1989_v58 = vmul.f32 1.442695, %v1988_v57 }
 0x80a   :  { %2889 = vpow2.f32 %v1965_v5 }
 0x80b   :  { %2891 = vpow2.f32 %v1989_v58 }
 0x810   :  { %v2890_v59 = vpop.eup %2889 }
 0x811   :  { %v1967_v61 = vsel %vm1956_vm1, %v2890_v59, 0.0  ;;  %v2892_v62 = vpop.eup %2891 }
 0x812   :  { %1968 = vadd.xlane.f32.xlu2 %v1967_v61  ;;  %v1991_v60 = vsel %vm3679_vm15, %v2892_v62, 0.0 }
 0x81a   :  { %1992 = vadd.xlane.f32.xlu2 %v1991_v60 }
 0x885   :  { %v1969_v63 = vpop.xlane.xlu2 %1968 }
 0x886   :  { %2893 = vrcp.f32 %v1969_v63  ;;  %v1981_v8 = vand.u32 2147483648, %v1969_v63  ;;  %vm1975_vm7 = vweird.f32 %v1969_v63  ;;  %v1979_v9 = vand.u32 2147483647, %v1969_v63 }
 0x888   :  { %v1982_v14 = vor.u32 1.1754944e-38, %v1981_v8  ;;  %vm1980_vm10 = vcmp.eq.f32.partialorder %v1979_v9, 8.507059e+37 }
 0x88c   :  { %v2894_v0 = vpop.eup %2893 }
 0x88d   :  { %v1971_v1 = vmul.f32 %v2894_v0, %v1969_v63  ;;  %v1993_v2 = vpop.xlane.xlu2 %1992  ;;  %vm1976_vm6 = vweird.f32 %v2894_v0 }
 0x88e   :  { %2895 = vrcp.f32 %v1993_v2  ;;  %vm1977_vm8 = vmor %vm1975_vm7, %vm1976_vm6  ;;  %v2005_v11 = vand.u32 2147483648, %v1993_v2  ;;  %v2003_v12 = vand.u32 2147483647, %v1993_v2  ;;  %vm1999_vm11 = vweird.f32 %v1993_v2 }
 0x88f   :  { %v1972_v3 = vsub.f32 1.0, %v1971_v1 }
 0x890   :  { %v2006_v16 = vor.u32 1.1754944e-38, %v2005_v11  ;;  %vm2004_vm13 = vcmp.eq.f32.partialorder %v2003_v12, 8.507059e+37 }
 0x891   :  { %v1973_v4 = vmul.f32 %v2894_v0, %v1972_v3 }
 0x893   :  { %v1974_v6 = vadd.f32 %v2894_v0, %v1973_v4 }
 0x894   :  { %v2896_v44 = vpop.eup %2895 }
 0x895   :  { %v1995_v7 = vmul.f32 %v2896_v44, %v1993_v2  ;;  %vm2000_vm9 = vweird.f32 %v2896_v44  ;;  %v1978_v13 = vsel %vm1977_vm8, %v2894_v0, %v1974_v6 }
 0x896   :  { %vm2001_vm12 = vmor %vm1999_vm11, %vm2000_vm9  ;;  %v1983_v17 = vsel %vm1980_vm10, %v1982_v14, %v1978_v13 }
 0x897   :  { %v1996_v10 = vsub.f32 1.0, %v1995_v7  ;;  %v1984_v20 = vmul.f32 %v1983_v17, %v1967_v61 }
 0x899   :  { %v1997_v49 = vmul.f32 %v2896_v44, %v1996_v10 }
 0x89b   :  { %v1998_v15 = vadd.f32 %v2896_v44, %v1997_v49 }
 0x89d   :  { %v2002_v18 = vsel %vm2001_vm12, %v2896_v44, %v1998_v15 }
 0x89e   :  { %v2007_v19 = vsel %vm2004_vm13, %v2006_v16, %v2002_v18 }
 0x89f   :  { %v2008_v21 = vmul.f32 %v2007_v19, %v1991_v60 }
 0x8a1   :  { %v2029_v22 = vadd.f32 %v2008_v21, %v1984_v20 }
 0x8a3   :  { %v2030_v23 = vadd.f32 %v2029_v22, %v2028_v53 }
 0x8a5   :  { %2031 = vst [vmem:[#allocation2] sm:$0xff] %v2030_v23 }
 0x8a6   :  { %2042 = dma.vmem_to_hbm [thread:$0]  %s2038_s7, 128, %s2040_s10, [#allocation3]  }
 0x8a7   :  { %2922 = dma.done.wait [#allocation3], 128  }
 0x8a8   :  { %2923 = vsyncadd [#allocation3], 4294967168 }
 0x8a9   :  { %2047 = vsyncpa [#allocation3], 1 }

</bundles_post_ra>
